<compile_context>
chip_gen: v7x
topology: tpu7x:2x2x1
jax: 0.10.0
libtpu: 0.0.40
codegen_flags: <defaults>
</compile_context>

<pallas_src>
import jax
import jax.numpy as jnp
from jax.experimental import pallas as pl
from jax.experimental.pallas import tpu as pltpu


# ----------------------------------------------------------------------------
# Pallas kernel: one invocation per batch tile; loops over all coupling layers.
# ----------------------------------------------------------------------------
def _realnvp_kernel(masks_ref,
                    sw1_ref, sb1_ref, sw2_ref, sb2_ref, sw3_ref, sb3_ref,
                    tw1_ref, tb1_ref, tw2_ref, tb2_ref, tw3_ref, tb3_ref,
                    x_ref, out_ref):
    x = x_ref[...]                       # (bt, Dp) f32 carry
    n_layers = masks_ref.shape[0]
    cdt = sw1_ref.dtype                  # MXU operand dtype (f32 or bf16)

    # Static layer count -> Python loop fully unrolls at trace time, which also
    # lets us index the stacked weight refs with static indices.
    for l in range(n_layers):
        mask = masks_ref[l]              # (1, Dp)
        inv = 1.0 - mask
        mx = mask * x                    # (bt, Dp)
        mxc = mx.astype(cdt)

        # scale net: Linear-ReLU-Linear-ReLU-Linear-Tanh
        hs = jnp.dot(mxc, sw1_ref[l], preferred_element_type=jnp.float32) + sb1_ref[l]
        hs = jnp.maximum(hs, 0.0).astype(cdt)
        hs = jnp.dot(hs, sw2_ref[l], preferred_element_type=jnp.float32) + sb2_ref[l]
        hs = jnp.maximum(hs, 0.0).astype(cdt)
        scale = jnp.tanh(
            jnp.dot(hs, sw3_ref[l], preferred_element_type=jnp.float32) + sb3_ref[l])

        # translation net: Linear-ReLU-Linear-ReLU-Linear
        ht = jnp.dot(mxc, tw1_ref[l], preferred_element_type=jnp.float32) + tb1_ref[l]
        ht = jnp.maximum(ht, 0.0).astype(cdt)
        ht = jnp.dot(ht, tw2_ref[l], preferred_element_type=jnp.float32) + tb2_ref[l]
        ht = jnp.maximum(ht, 0.0).astype(cdt)
        trans = jnp.dot(ht, tw3_ref[l], preferred_element_type=jnp.float32) + tb3_ref[l]

        # Mask is binary, so applying (1-mask) once here is exact w.r.t. the
        # reference's scale*(1-mask) / translation*(1-mask) formulation.
        x = mx + inv * (x * jnp.exp(scale) + trans)

    out_ref[...] = x.astype(out_ref.dtype)


# ----------------------------------------------------------------------------
# Wrapper: lane/sublane padding + one pallas_call over batch tiles.
# ----------------------------------------------------------------------------
def _round_up(n, m):
    return ((n + m - 1) // m) * m


def _pad_axis(a, axis, new_size, value=0.0):
    pad = new_size - a.shape[axis]
    if pad <= 0:
        return a
    cfg = [(0, 0)] * a.ndim
    cfg[axis] = (0, pad)
    return jnp.pad(a, cfg, constant_values=value)


def realnvp_forward(x, masks, params, *, mxu_dtype=jnp.float32, batch_tile=128):
    """x: (B, D) f32.  masks: (L, 1, D).  params: dict of stacked per-layer arrays."""
    B, D = x.shape

    # Lane-dense padding of feature / hidden dims (exact: padded weight rows /
    # cols and biases are zero, padded mask entries are 1, padded x is 0, so
    # padded features stay identically zero through every layer).
    Dp = _round_up(D, 128)
    Hp = _round_up(params["sw1"].shape[-1], 128)

    def padded(name, ax_sizes, cast=False):
        a = params[name]
        for ax, ns in ax_sizes:
            a = _pad_axis(a, ax, ns)
        return a.astype(mxu_dtype) if cast else a

    w = {}
    for pre in ("s", "t"):
        w[pre + "w1"] = padded(pre + "w1", [(1, Dp), (2, Hp)], cast=True)
        w[pre + "b1"] = padded(pre + "b1", [(2, Hp)])
        w[pre + "w2"] = padded(pre + "w2", [(1, Hp), (2, Hp)], cast=True)
        w[pre + "b2"] = padded(pre + "b2", [(2, Hp)])
        w[pre + "w3"] = padded(pre + "w3", [(1, Hp), (2, Dp)], cast=True)
        w[pre + "b3"] = padded(pre + "b3", [(2, Dp)])

    masks_p = _pad_axis(masks, 2, Dp, value=1.0)   # padded features pass through
    x_p = _pad_axis(x, 1, Dp)

    # Batch tiling: rows are independent -> "parallel" grid axis.
    bt = batch_tile if B >= batch_tile else _round_up(B, 8)
    Bp = _round_up(B, bt)
    x_p = _pad_axis(x_p, 0, Bp)

    ordered = [w[k] for k in ("sw1", "sb1", "sw2", "sb2", "sw3", "sb3",
                              "tw1", "tb1", "tw2", "tb2", "tw3", "tb3")]

    def full_spec(a):
        # Whole array resident in VMEM (block == full array, constant index map
        # -> DMA'd once, reused across all batch tiles).
        return pl.BlockSpec(a.shape, lambda i: (0,) * a.ndim)

    in_specs = ([full_spec(masks_p)] + [full_spec(a) for a in ordered]
                + [pl.BlockSpec((bt, Dp), lambda i: (i, 0))])
    out_spec = pl.BlockSpec((bt, Dp), lambda i: (i, 0))

    out = pl.pallas_call(
        _realnvp_kernel,
        out_shape=jax.ShapeDtypeStruct((Bp, Dp), x.dtype),
        grid_spec=pltpu.PrefetchScalarGridSpec(
            num_scalar_prefetch=0,
            grid=(Bp // bt,),
            in_specs=in_specs,
            out_specs=out_spec,
        ),
        compiler_params=pltpu.CompilerParams(
            dimension_semantics=("parallel",)),
        input_output_aliases={13: 0},   # x (operand 13) aliases the output
    )(masks_p, *ordered, x_p)

    if Bp != B or Dp != D:
        out = out[:B, :D]
    return out


# ----------------------------------------------------------------------------
# Parameter / mask construction (deterministic, PyTorch-style shapes).
# ----------------------------------------------------------------------------
def make_masks(input_dim, n_flows):
    mask = (jnp.arange(input_dim) % 2).astype(jnp.float32)
    if input_dim % 2 == 1:
        mask = jnp.where(jnp.arange(input_dim) < input_dim // 2 + 1, 1.0, 0.0)
    masks = []
    for _ in range(n_flows):
        masks.append(mask)
        masks.append(1.0 - mask)
    return jnp.stack(masks, axis=0)[:, None, :]        # (L, 1, D)


def make_params(key, input_dim, hidden_dim, n_layers):
    """Stacked nn.Linear params, uniform(-1/sqrt(fan_in), 1/sqrt(fan_in))."""
    shapes = {
        "w1": (input_dim, hidden_dim), "b1": (1, hidden_dim),
        "w2": (hidden_dim, hidden_dim), "b2": (1, hidden_dim),
        "w3": (hidden_dim, input_dim), "b3": (1, input_dim),
    }
    fan_ins = {"1": input_dim, "2": hidden_dim, "3": hidden_dim}
    params = {}
    for pre in ("s", "t"):
        for name, shape in shapes.items():
            key, sub = jax.random.split(key)
            bound = fan_ins[name[1]] ** -0.5
            params[pre + name] = jax.random.uniform(
                sub, (n_layers,) + shape, jnp.float32, minval=-bound, maxval=bound)
    return params


# ----------------------------------------------------------------------------
# Pure-JAX reference (exact PyTorch forward semantics, unfused, unpadded, f32).
# ----------------------------------------------------------------------------
def realnvp_reference(x, masks, params):
    L = masks.shape[0]
    for l in range(L):
        mask = masks[l]                     # (1, D)
        inv = 1.0 - mask
        mx = mask * x

        def mlp(pfx):
            h = jnp.maximum(mx @ params[pfx + "w1"][l] + params[pfx + "b1"][l], 0.0)
            h = jnp.maximum(h @ params[pfx + "w2"][l] + params[pfx + "b2"][l], 0.0)
            return h @ params[pfx + "w3"][l] + params[pfx + "b3"][l]

        scale = jnp.tanh(mlp("s")) * inv
        trans = mlp("t") * inv
        x = mx + inv * (x * jnp.exp(scale) + trans)
    return x


if __name__ == "__main__":
    B, D, H, n_flows = 8, 16, 32, 2
    L = 2 * n_flows

    key = jax.random.PRNGKey(0)
    kx, kp = jax.random.split(key)
    x = jax.random.normal(kx, (B, D), jnp.float32)
    masks = make_masks(D, n_flows)
    params = make_params(kp, D, H, L)

    # Reference first (x's buffer is aliased to the kernel output).
    ref = jax.block_until_ready(realnvp_reference(x, masks, params))

    out = jax.block_until_ready(realnvp_forward(x, masks, params))

    assert out.shape == ref.shape
    assert jnp.allclose(out, ref, atol=1e-5, rtol=1e-5), "mismatch vs reference"

    # TODO(synk): for production sizes, pass mxu_dtype=jnp.bfloat16 (f32 accum
    # is kept) and use batch_tile as large as VMEM allows.
    print("KERNEL_OK")
</pallas_src>

<mosaic_0001>
module attributes {stable_mosaic.version = 11 : i64} {
  func.func @_realnvp_kernel(%arg0: i32, %arg1: memref<4x1x128xf32, #tpu.memory_space<vmem>>, %arg2: memref<4x128x128xf32, #tpu.memory_space<vmem>>, %arg3: memref<4x1x128xf32, #tpu.memory_space<vmem>>, %arg4: memref<4x128x128xf32, #tpu.memory_space<vmem>>, %arg5: memref<4x1x128xf32, #tpu.memory_space<vmem>>, %arg6: memref<4x128x128xf32, #tpu.memory_space<vmem>>, %arg7: memref<4x1x128xf32, #tpu.memory_space<vmem>>, %arg8: memref<4x128x128xf32, #tpu.memory_space<vmem>>, %arg9: memref<4x1x128xf32, #tpu.memory_space<vmem>>, %arg10: memref<4x128x128xf32, #tpu.memory_space<vmem>>, %arg11: memref<4x1x128xf32, #tpu.memory_space<vmem>>, %arg12: memref<4x128x128xf32, #tpu.memory_space<vmem>>, %arg13: memref<4x1x128xf32, #tpu.memory_space<vmem>>, %arg14: memref<8x128xf32, #tpu.memory_space<vmem>>, %arg15: memref<8x128xf32, #tpu.memory_space<vmem>>) attributes {dimension_semantics = [#tpu.dimension_semantics<parallel>], iteration_bounds = array<i64: 1>, scalar_prefetch = 0 : i64, scratch_operands = 0 : i64, tpu.core_type = #tpu.core_type<tc>, window_params = [{pipeline_mode = #tpu.pipeline_mode<synchronous>, transform_indices = @transform_0, window_bounds = array<i64: 4, 1, 128>}, {pipeline_mode = #tpu.pipeline_mode<synchronous>, transform_indices = @transform_1, window_bounds = array<i64: 4, 128, 128>}, {pipeline_mode = #tpu.pipeline_mode<synchronous>, transform_indices = @transform_2, window_bounds = array<i64: 4, 1, 128>}, {pipeline_mode = #tpu.pipeline_mode<synchronous>, transform_indices = @transform_3, window_bounds = array<i64: 4, 128, 128>}, {pipeline_mode = #tpu.pipeline_mode<synchronous>, transform_indices = @transform_4, window_bounds = array<i64: 4, 1, 128>}, {pipeline_mode = #tpu.pipeline_mode<synchronous>, transform_indices = @transform_5, window_bounds = array<i64: 4, 128, 128>}, {pipeline_mode = #tpu.pipeline_mode<synchronous>, transform_indices = @transform_6, window_bounds = array<i64: 4, 1, 128>}, {pipeline_mode = #tpu.pipeline_mode<synchronous>, transform_indices = @transform_7, window_bounds = array<i64: 4, 128, 128>}, {pipeline_mode = #tpu.pipeline_mode<synchronous>, transform_indices = @transform_8, window_bounds = array<i64: 4, 1, 128>}, {pipeline_mode = #tpu.pipeline_mode<synchronous>, transform_indices = @transform_9, window_bounds = array<i64: 4, 128, 128>}, {pipeline_mode = #tpu.pipeline_mode<synchronous>, transform_indices = @transform_10, window_bounds = array<i64: 4, 1, 128>}, {pipeline_mode = #tpu.pipeline_mode<synchronous>, transform_indices = @transform_11, window_bounds = array<i64: 4, 128, 128>}, {pipeline_mode = #tpu.pipeline_mode<synchronous>, transform_indices = @transform_12, window_bounds = array<i64: 4, 1, 128>}, {transform_indices = @transform_13, window_bounds = array<i64: 8, 128>}, {transform_indices = @transform_14, window_bounds = array<i64: 8, 128>}]} {
    %c0 = arith.constant 0 : index
    %c0_0 = arith.constant 0 : index
    %0 = vector.load %arg14[%c0, %c0_0] : memref<8x128xf32, #tpu.memory_space<vmem>>, vector<8x128xf32>
    %c0_1 = arith.constant 0 : index
    %c0_2 = arith.constant 0 : index
    %c0_3 = arith.constant 0 : index
    %1 = vector.load %arg1[%c0_1, %c0_2, %c0_3] : memref<4x1x128xf32, #tpu.memory_space<vmem>>, vector<1x1x128xf32>
    %2 = vector.shape_cast %1 : vector<1x1x128xf32> to vector<1x128xf32>
    %cst = arith.constant 1.000000e+00 : f32
    %3 = vector.broadcast %cst : f32 to vector<1x128xf32>
    %4 = arith.subf %3, %2 : vector<1x128xf32>
    %5 = vector.broadcast %2 : vector<1x128xf32> to vector<8x128xf32>
    %6 = arith.mulf %5, %0 : vector<8x128xf32>
    %c0_4 = arith.constant 0 : index
    %c0_5 = arith.constant 0 : index
    %c0_6 = arith.constant 0 : index
    %7 = vector.load %arg2[%c0_4, %c0_5, %c0_6] : memref<4x128x128xf32, #tpu.memory_space<vmem>>, vector<1x128x128xf32>
    %8 = vector.shape_cast %7 : vector<1x128x128xf32> to vector<128x128xf32>
    %cst_7 = arith.constant dense<0.000000e+00> : vector<8x128xf32>
    %9 = tpu.matmul %6, %8, %cst_7 {dimension_numbers = #tpu.dot_dimension_numbers<[1], [0], [0], [1], [0, 0, 1, 1], [], []>} : vector<8x128xf32>, vector<128x128xf32>, vector<8x128xf32> -> vector<8x128xf32>
    %c0_8 = arith.constant 0 : index
    %c0_9 = arith.constant 0 : index
    %c0_10 = arith.constant 0 : index
    %10 = vector.load %arg3[%c0_8, %c0_9, %c0_10] : memref<4x1x128xf32, #tpu.memory_space<vmem>>, vector<1x1x128xf32>
    %11 = vector.shape_cast %10 : vector<1x1x128xf32> to vector<1x128xf32>
    %12 = vector.broadcast %11 : vector<1x128xf32> to vector<8x128xf32>
    %13 = arith.addf %9, %12 : vector<8x128xf32>
    %cst_11 = arith.constant 0.000000e+00 : f32
    %14 = vector.broadcast %cst_11 : f32 to vector<8x128xf32>
    %15 = arith.maximumf %13, %14 : vector<8x128xf32>
    %c0_12 = arith.constant 0 : index
    %c0_13 = arith.constant 0 : index
    %c0_14 = arith.constant 0 : index
    %16 = vector.load %arg4[%c0_12, %c0_13, %c0_14] : memref<4x128x128xf32, #tpu.memory_space<vmem>>, vector<1x128x128xf32>
    %17 = vector.shape_cast %16 : vector<1x128x128xf32> to vector<128x128xf32>
    %cst_15 = arith.constant dense<0.000000e+00> : vector<8x128xf32>
    %18 = tpu.matmul %15, %17, %cst_15 {dimension_numbers = #tpu.dot_dimension_numbers<[1], [0], [0], [1], [0, 0, 1, 1], [], []>} : vector<8x128xf32>, vector<128x128xf32>, vector<8x128xf32> -> vector<8x128xf32>
    %c0_16 = arith.constant 0 : index
    %c0_17 = arith.constant 0 : index
    %c0_18 = arith.constant 0 : index
    %19 = vector.load %arg5[%c0_16, %c0_17, %c0_18] : memref<4x1x128xf32, #tpu.memory_space<vmem>>, vector<1x1x128xf32>
    %20 = vector.shape_cast %19 : vector<1x1x128xf32> to vector<1x128xf32>
    %21 = vector.broadcast %20 : vector<1x128xf32> to vector<8x128xf32>
    %22 = arith.addf %18, %21 : vector<8x128xf32>
    %cst_19 = arith.constant 0.000000e+00 : f32
    %23 = vector.broadcast %cst_19 : f32 to vector<8x128xf32>
    %24 = arith.maximumf %22, %23 : vector<8x128xf32>
    %c0_20 = arith.constant 0 : index
    %c0_21 = arith.constant 0 : index
    %c0_22 = arith.constant 0 : index
    %25 = vector.load %arg6[%c0_20, %c0_21, %c0_22] : memref<4x128x128xf32, #tpu.memory_space<vmem>>, vector<1x128x128xf32>
    %26 = vector.shape_cast %25 : vector<1x128x128xf32> to vector<128x128xf32>
    %cst_23 = arith.constant dense<0.000000e+00> : vector<8x128xf32>
    %27 = tpu.matmul %24, %26, %cst_23 {dimension_numbers = #tpu.dot_dimension_numbers<[1], [0], [0], [1], [0, 0, 1, 1], [], []>} : vector<8x128xf32>, vector<128x128xf32>, vector<8x128xf32> -> vector<8x128xf32>
    %c0_24 = arith.constant 0 : index
    %c0_25 = arith.constant 0 : index
    %c0_26 = arith.constant 0 : index
    %28 = vector.load %arg7[%c0_24, %c0_25, %c0_26] : memref<4x1x128xf32, #tpu.memory_space<vmem>>, vector<1x1x128xf32>
    %29 = vector.shape_cast %28 : vector<1x1x128xf32> to vector<1x128xf32>
    %30 = vector.broadcast %29 : vector<1x128xf32> to vector<8x128xf32>
    %31 = arith.addf %27, %30 : vector<8x128xf32>
    %32 = math.tanh %31 : vector<8x128xf32>
    %c0_27 = arith.constant 0 : index
    %c0_28 = arith.constant 0 : index
    %c0_29 = arith.constant 0 : index
    %33 = vector.load %arg8[%c0_27, %c0_28, %c0_29] : memref<4x128x128xf32, #tpu.memory_space<vmem>>, vector<1x128x128xf32>
    %34 = vector.shape_cast %33 : vector<1x128x128xf32> to vector<128x128xf32>
    %cst_30 = arith.constant dense<0.000000e+00> : vector<8x128xf32>
    %35 = tpu.matmul %6, %34, %cst_30 {dimension_numbers = #tpu.dot_dimension_numbers<[1], [0], [0], [1], [0, 0, 1, 1], [], []>} : vector<8x128xf32>, vector<128x128xf32>, vector<8x128xf32> -> vector<8x128xf32>
    %c0_31 = arith.constant 0 : index
    %c0_32 = arith.constant 0 : index
    %c0_33 = arith.constant 0 : index
    %36 = vector.load %arg9[%c0_31, %c0_32, %c0_33] : memref<4x1x128xf32, #tpu.memory_space<vmem>>, vector<1x1x128xf32>
    %37 = vector.shape_cast %36 : vector<1x1x128xf32> to vector<1x128xf32>
    %38 = vector.broadcast %37 : vector<1x128xf32> to vector<8x128xf32>
    %39 = arith.addf %35, %38 : vector<8x128xf32>
    %cst_34 = arith.constant 0.000000e+00 : f32
    %40 = vector.broadcast %cst_34 : f32 to vector<8x128xf32>
    %41 = arith.maximumf %39, %40 : vector<8x128xf32>
    %c0_35 = arith.constant 0 : index
    %c0_36 = arith.constant 0 : index
    %c0_37 = arith.constant 0 : index
    %42 = vector.load %arg10[%c0_35, %c0_36, %c0_37] : memref<4x128x128xf32, #tpu.memory_space<vmem>>, vector<1x128x128xf32>
    %43 = vector.shape_cast %42 : vector<1x128x128xf32> to vector<128x128xf32>
    %cst_38 = arith.constant dense<0.000000e+00> : vector<8x128xf32>
    %44 = tpu.matmul %41, %43, %cst_38 {dimension_numbers = #tpu.dot_dimension_numbers<[1], [0], [0], [1], [0, 0, 1, 1], [], []>} : vector<8x128xf32>, vector<128x128xf32>, vector<8x128xf32> -> vector<8x128xf32>
    %c0_39 = arith.constant 0 : index
    %c0_40 = arith.constant 0 : index
    %c0_41 = arith.constant 0 : index
    %45 = vector.load %arg11[%c0_39, %c0_40, %c0_41] : memref<4x1x128xf32, #tpu.memory_space<vmem>>, vector<1x1x128xf32>
    %46 = vector.shape_cast %45 : vector<1x1x128xf32> to vector<1x128xf32>
    %47 = vector.broadcast %46 : vector<1x128xf32> to vector<8x128xf32>
    %48 = arith.addf %44, %47 : vector<8x128xf32>
    %cst_42 = arith.constant 0.000000e+00 : f32
    %49 = vector.broadcast %cst_42 : f32 to vector<8x128xf32>
    %50 = arith.maximumf %48, %49 : vector<8x128xf32>
    %c0_43 = arith.constant 0 : index
    %c0_44 = arith.constant 0 : index
    %c0_45 = arith.constant 0 : index
    %51 = vector.load %arg12[%c0_43, %c0_44, %c0_45] : memref<4x128x128xf32, #tpu.memory_space<vmem>>, vector<1x128x128xf32>
    %52 = vector.shape_cast %51 : vector<1x128x128xf32> to vector<128x128xf32>
    %cst_46 = arith.constant dense<0.000000e+00> : vector<8x128xf32>
    %53 = tpu.matmul %50, %52, %cst_46 {dimension_numbers = #tpu.dot_dimension_numbers<[1], [0], [0], [1], [0, 0, 1, 1], [], []>} : vector<8x128xf32>, vector<128x128xf32>, vector<8x128xf32> -> vector<8x128xf32>
    %c0_47 = arith.constant 0 : index
    %c0_48 = arith.constant 0 : index
    %c0_49 = arith.constant 0 : index
    %54 = vector.load %arg13[%c0_47, %c0_48, %c0_49] : memref<4x1x128xf32, #tpu.memory_space<vmem>>, vector<1x1x128xf32>
    %55 = vector.shape_cast %54 : vector<1x1x128xf32> to vector<1x128xf32>
    %56 = vector.broadcast %55 : vector<1x128xf32> to vector<8x128xf32>
    %57 = arith.addf %53, %56 : vector<8x128xf32>
    %58 = math.exp %32 : vector<8x128xf32>
    %59 = arith.mulf %0, %58 : vector<8x128xf32>
    %60 = arith.addf %59, %57 : vector<8x128xf32>
    %61 = vector.broadcast %4 : vector<1x128xf32> to vector<8x128xf32>
    %62 = arith.mulf %61, %60 : vector<8x128xf32>
    %63 = arith.addf %6, %62 : vector<8x128xf32>
    %c1 = arith.constant 1 : index
    %c0_50 = arith.constant 0 : index
    %c0_51 = arith.constant 0 : index
    %64 = vector.load %arg1[%c1, %c0_50, %c0_51] : memref<4x1x128xf32, #tpu.memory_space<vmem>>, vector<1x1x128xf32>
    %65 = vector.shape_cast %64 : vector<1x1x128xf32> to vector<1x128xf32>
    %cst_52 = arith.constant 1.000000e+00 : f32
    %66 = vector.broadcast %cst_52 : f32 to vector<1x128xf32>
    %67 = arith.subf %66, %65 : vector<1x128xf32>
    %68 = vector.broadcast %65 : vector<1x128xf32> to vector<8x128xf32>
    %69 = arith.mulf %68, %63 : vector<8x128xf32>
    %c1_53 = arith.constant 1 : index
    %c0_54 = arith.constant 0 : index
    %c0_55 = arith.constant 0 : index
    %70 = vector.load %arg2[%c1_53, %c0_54, %c0_55] : memref<4x128x128xf32, #tpu.memory_space<vmem>>, vector<1x128x128xf32>
    %71 = vector.shape_cast %70 : vector<1x128x128xf32> to vector<128x128xf32>
    %cst_56 = arith.constant dense<0.000000e+00> : vector<8x128xf32>
    %72 = tpu.matmul %69, %71, %cst_56 {dimension_numbers = #tpu.dot_dimension_numbers<[1], [0], [0], [1], [0, 0, 1, 1], [], []>} : vector<8x128xf32>, vector<128x128xf32>, vector<8x128xf32> -> vector<8x128xf32>
    %c1_57 = arith.constant 1 : index
    %c0_58 = arith.constant 0 : index
    %c0_59 = arith.constant 0 : index
    %73 = vector.load %arg3[%c1_57, %c0_58, %c0_59] : memref<4x1x128xf32, #tpu.memory_space<vmem>>, vector<1x1x128xf32>
    %74 = vector.shape_cast %73 : vector<1x1x128xf32> to vector<1x128xf32>
    %75 = vector.broadcast %74 : vector<1x128xf32> to vector<8x128xf32>
    %76 = arith.addf %72, %75 : vector<8x128xf32>
    %cst_60 = arith.constant 0.000000e+00 : f32
    %77 = vector.broadcast %cst_60 : f32 to vector<8x128xf32>
    %78 = arith.maximumf %76, %77 : vector<8x128xf32>
    %c1_61 = arith.constant 1 : index
    %c0_62 = arith.constant 0 : index
    %c0_63 = arith.constant 0 : index
    %79 = vector.load %arg4[%c1_61, %c0_62, %c0_63] : memref<4x128x128xf32, #tpu.memory_space<vmem>>, vector<1x128x128xf32>
    %80 = vector.shape_cast %79 : vector<1x128x128xf32> to vector<128x128xf32>
    %cst_64 = arith.constant dense<0.000000e+00> : vector<8x128xf32>
    %81 = tpu.matmul %78, %80, %cst_64 {dimension_numbers = #tpu.dot_dimension_numbers<[1], [0], [0], [1], [0, 0, 1, 1], [], []>} : vector<8x128xf32>, vector<128x128xf32>, vector<8x128xf32> -> vector<8x128xf32>
    %c1_65 = arith.constant 1 : index
    %c0_66 = arith.constant 0 : index
    %c0_67 = arith.constant 0 : index
    %82 = vector.load %arg5[%c1_65, %c0_66, %c0_67] : memref<4x1x128xf32, #tpu.memory_space<vmem>>, vector<1x1x128xf32>
    %83 = vector.shape_cast %82 : vector<1x1x128xf32> to vector<1x128xf32>
    %84 = vector.broadcast %83 : vector<1x128xf32> to vector<8x128xf32>
    %85 = arith.addf %81, %84 : vector<8x128xf32>
    %cst_68 = arith.constant 0.000000e+00 : f32
    %86 = vector.broadcast %cst_68 : f32 to vector<8x128xf32>
    %87 = arith.maximumf %85, %86 : vector<8x128xf32>
    %c1_69 = arith.constant 1 : index
    %c0_70 = arith.constant 0 : index
    %c0_71 = arith.constant 0 : index
    %88 = vector.load %arg6[%c1_69, %c0_70, %c0_71] : memref<4x128x128xf32, #tpu.memory_space<vmem>>, vector<1x128x128xf32>
    %89 = vector.shape_cast %88 : vector<1x128x128xf32> to vector<128x128xf32>
    %cst_72 = arith.constant dense<0.000000e+00> : vector<8x128xf32>
    %90 = tpu.matmul %87, %89, %cst_72 {dimension_numbers = #tpu.dot_dimension_numbers<[1], [0], [0], [1], [0, 0, 1, 1], [], []>} : vector<8x128xf32>, vector<128x128xf32>, vector<8x128xf32> -> vector<8x128xf32>
    %c1_73 = arith.constant 1 : index
    %c0_74 = arith.constant 0 : index
    %c0_75 = arith.constant 0 : index
    %91 = vector.load %arg7[%c1_73, %c0_74, %c0_75] : memref<4x1x128xf32, #tpu.memory_space<vmem>>, vector<1x1x128xf32>
    %92 = vector.shape_cast %91 : vector<1x1x128xf32> to vector<1x128xf32>
    %93 = vector.broadcast %92 : vector<1x128xf32> to vector<8x128xf32>
    %94 = arith.addf %90, %93 : vector<8x128xf32>
    %95 = math.tanh %94 : vector<8x128xf32>
    %c1_76 = arith.constant 1 : index
    %c0_77 = arith.constant 0 : index
    %c0_78 = arith.constant 0 : index
    %96 = vector.load %arg8[%c1_76, %c0_77, %c0_78] : memref<4x128x128xf32, #tpu.memory_space<vmem>>, vector<1x128x128xf32>
    %97 = vector.shape_cast %96 : vector<1x128x128xf32> to vector<128x128xf32>
    %cst_79 = arith.constant dense<0.000000e+00> : vector<8x128xf32>
    %98 = tpu.matmul %69, %97, %cst_79 {dimension_numbers = #tpu.dot_dimension_numbers<[1], [0], [0], [1], [0, 0, 1, 1], [], []>} : vector<8x128xf32>, vector<128x128xf32>, vector<8x128xf32> -> vector<8x128xf32>
    %c1_80 = arith.constant 1 : index
    %c0_81 = arith.constant 0 : index
    %c0_82 = arith.constant 0 : index
    %99 = vector.load %arg9[%c1_80, %c0_81, %c0_82] : memref<4x1x128xf32, #tpu.memory_space<vmem>>, vector<1x1x128xf32>
    %100 = vector.shape_cast %99 : vector<1x1x128xf32> to vector<1x128xf32>
    %101 = vector.broadcast %100 : vector<1x128xf32> to vector<8x128xf32>
    %102 = arith.addf %98, %101 : vector<8x128xf32>
    %cst_83 = arith.constant 0.000000e+00 : f32
    %103 = vector.broadcast %cst_83 : f32 to vector<8x128xf32>
    %104 = arith.maximumf %102, %103 : vector<8x128xf32>
    %c1_84 = arith.constant 1 : index
    %c0_85 = arith.constant 0 : index
    %c0_86 = arith.constant 0 : index
    %105 = vector.load %arg10[%c1_84, %c0_85, %c0_86] : memref<4x128x128xf32, #tpu.memory_space<vmem>>, vector<1x128x128xf32>
    %106 = vector.shape_cast %105 : vector<1x128x128xf32> to vector<128x128xf32>
    %cst_87 = arith.constant dense<0.000000e+00> : vector<8x128xf32>
    %107 = tpu.matmul %104, %106, %cst_87 {dimension_numbers = #tpu.dot_dimension_numbers<[1], [0], [0], [1], [0, 0, 1, 1], [], []>} : vector<8x128xf32>, vector<128x128xf32>, vector<8x128xf32> -> vector<8x128xf32>
    %c1_88 = arith.constant 1 : index
    %c0_89 = arith.constant 0 : index
    %c0_90 = arith.constant 0 : index
    %108 = vector.load %arg11[%c1_88, %c0_89, %c0_90] : memref<4x1x128xf32, #tpu.memory_space<vmem>>, vector<1x1x128xf32>
    %109 = vector.shape_cast %108 : vector<1x1x128xf32> to vector<1x128xf32>
    %110 = vector.broadcast %109 : vector<1x128xf32> to vector<8x128xf32>
    %111 = arith.addf %107, %110 : vector<8x128xf32>
    %cst_91 = arith.constant 0.000000e+00 : f32
    %112 = vector.broadcast %cst_91 : f32 to vector<8x128xf32>
    %113 = arith.maximumf %111, %112 : vector<8x128xf32>
    %c1_92 = arith.constant 1 : index
    %c0_93 = arith.constant 0 : index
    %c0_94 = arith.constant 0 : index
    %114 = vector.load %arg12[%c1_92, %c0_93, %c0_94] : memref<4x128x128xf32, #tpu.memory_space<vmem>>, vector<1x128x128xf32>
    %115 = vector.shape_cast %114 : vector<1x128x128xf32> to vector<128x128xf32>
    %cst_95 = arith.constant dense<0.000000e+00> : vector<8x128xf32>
    %116 = tpu.matmul %113, %115, %cst_95 {dimension_numbers = #tpu.dot_dimension_numbers<[1], [0], [0], [1], [0, 0, 1, 1], [], []>} : vector<8x128xf32>, vector<128x128xf32>, vector<8x128xf32> -> vector<8x128xf32>
    %c1_96 = arith.constant 1 : index
    %c0_97 = arith.constant 0 : index
    %c0_98 = arith.constant 0 : index
    %117 = vector.load %arg13[%c1_96, %c0_97, %c0_98] : memref<4x1x128xf32, #tpu.memory_space<vmem>>, vector<1x1x128xf32>
    %118 = vector.shape_cast %117 : vector<1x1x128xf32> to vector<1x128xf32>
    %119 = vector.broadcast %118 : vector<1x128xf32> to vector<8x128xf32>
    %120 = arith.addf %116, %119 : vector<8x128xf32>
    %121 = math.exp %95 : vector<8x128xf32>
    %122 = arith.mulf %63, %121 : vector<8x128xf32>
    %123 = arith.addf %122, %120 : vector<8x128xf32>
    %124 = vector.broadcast %67 : vector<1x128xf32> to vector<8x128xf32>
    %125 = arith.mulf %124, %123 : vector<8x128xf32>
    %126 = arith.addf %69, %125 : vector<8x128xf32>
    %c2 = arith.constant 2 : index
    %c0_99 = arith.constant 0 : index
    %c0_100 = arith.constant 0 : index
    %127 = vector.load %arg1[%c2, %c0_99, %c0_100] : memref<4x1x128xf32, #tpu.memory_space<vmem>>, vector<1x1x128xf32>
    %128 = vector.shape_cast %127 : vector<1x1x128xf32> to vector<1x128xf32>
    %cst_101 = arith.constant 1.000000e+00 : f32
    %129 = vector.broadcast %cst_101 : f32 to vector<1x128xf32>
    %130 = arith.subf %129, %128 : vector<1x128xf32>
    %131 = vector.broadcast %128 : vector<1x128xf32> to vector<8x128xf32>
    %132 = arith.mulf %131, %126 : vector<8x128xf32>
    %c2_102 = arith.constant 2 : index
    %c0_103 = arith.constant 0 : index
    %c0_104 = arith.constant 0 : index
    %133 = vector.load %arg2[%c2_102, %c0_103, %c0_104] : memref<4x128x128xf32, #tpu.memory_space<vmem>>, vector<1x128x128xf32>
    %134 = vector.shape_cast %133 : vector<1x128x128xf32> to vector<128x128xf32>
    %cst_105 = arith.constant dense<0.000000e+00> : vector<8x128xf32>
    %135 = tpu.matmul %132, %134, %cst_105 {dimension_numbers = #tpu.dot_dimension_numbers<[1], [0], [0], [1], [0, 0, 1, 1], [], []>} : vector<8x128xf32>, vector<128x128xf32>, vector<8x128xf32> -> vector<8x128xf32>
    %c2_106 = arith.constant 2 : index
    %c0_107 = arith.constant 0 : index
    %c0_108 = arith.constant 0 : index
    %136 = vector.load %arg3[%c2_106, %c0_107, %c0_108] : memref<4x1x128xf32, #tpu.memory_space<vmem>>, vector<1x1x128xf32>
    %137 = vector.shape_cast %136 : vector<1x1x128xf32> to vector<1x128xf32>
    %138 = vector.broadcast %137 : vector<1x128xf32> to vector<8x128xf32>
    %139 = arith.addf %135, %138 : vector<8x128xf32>
    %cst_109 = arith.constant 0.000000e+00 : f32
    %140 = vector.broadcast %cst_109 : f32 to vector<8x128xf32>
    %141 = arith.maximumf %139, %140 : vector<8x128xf32>
    %c2_110 = arith.constant 2 : index
    %c0_111 = arith.constant 0 : index
    %c0_112 = arith.constant 0 : index
    %142 = vector.load %arg4[%c2_110, %c0_111, %c0_112] : memref<4x128x128xf32, #tpu.memory_space<vmem>>, vector<1x128x128xf32>
    %143 = vector.shape_cast %142 : vector<1x128x128xf32> to vector<128x128xf32>
    %cst_113 = arith.constant dense<0.000000e+00> : vector<8x128xf32>
    %144 = tpu.matmul %141, %143, %cst_113 {dimension_numbers = #tpu.dot_dimension_numbers<[1], [0], [0], [1], [0, 0, 1, 1], [], []>} : vector<8x128xf32>, vector<128x128xf32>, vector<8x128xf32> -> vector<8x128xf32>
    %c2_114 = arith.constant 2 : index
    %c0_115 = arith.constant 0 : index
    %c0_116 = arith.constant 0 : index
    %145 = vector.load %arg5[%c2_114, %c0_115, %c0_116] : memref<4x1x128xf32, #tpu.memory_space<vmem>>, vector<1x1x128xf32>
    %146 = vector.shape_cast %145 : vector<1x1x128xf32> to vector<1x128xf32>
    %147 = vector.broadcast %146 : vector<1x128xf32> to vector<8x128xf32>
    %148 = arith.addf %144, %147 : vector<8x128xf32>
    %cst_117 = arith.constant 0.000000e+00 : f32
    %149 = vector.broadcast %cst_117 : f32 to vector<8x128xf32>
    %150 = arith.maximumf %148, %149 : vector<8x128xf32>
    %c2_118 = arith.constant 2 : index
    %c0_119 = arith.constant 0 : index
    %c0_120 = arith.constant 0 : index
    %151 = vector.load %arg6[%c2_118, %c0_119, %c0_120] : memref<4x128x128xf32, #tpu.memory_space<vmem>>, vector<1x128x128xf32>
    %152 = vector.shape_cast %151 : vector<1x128x128xf32> to vector<128x128xf32>
    %cst_121 = arith.constant dense<0.000000e+00> : vector<8x128xf32>
    %153 = tpu.matmul %150, %152, %cst_121 {dimension_numbers = #tpu.dot_dimension_numbers<[1], [0], [0], [1], [0, 0, 1, 1], [], []>} : vector<8x128xf32>, vector<128x128xf32>, vector<8x128xf32> -> vector<8x128xf32>
    %c2_122 = arith.constant 2 : index
    %c0_123 = arith.constant 0 : index
    %c0_124 = arith.constant 0 : index
    %154 = vector.load %arg7[%c2_122, %c0_123, %c0_124] : memref<4x1x128xf32, #tpu.memory_space<vmem>>, vector<1x1x128xf32>
    %155 = vector.shape_cast %154 : vector<1x1x128xf32> to vector<1x128xf32>
    %156 = vector.broadcast %155 : vector<1x128xf32> to vector<8x128xf32>
    %157 = arith.addf %153, %156 : vector<8x128xf32>
    %158 = math.tanh %157 : vector<8x128xf32>
    %c2_125 = arith.constant 2 : index
    %c0_126 = arith.constant 0 : index
    %c0_127 = arith.constant 0 : index
    %159 = vector.load %arg8[%c2_125, %c0_126, %c0_127] : memref<4x128x128xf32, #tpu.memory_space<vmem>>, vector<1x128x128xf32>
    %160 = vector.shape_cast %159 : vector<1x128x128xf32> to vector<128x128xf32>
    %cst_128 = arith.constant dense<0.000000e+00> : vector<8x128xf32>
    %161 = tpu.matmul %132, %160, %cst_128 {dimension_numbers = #tpu.dot_dimension_numbers<[1], [0], [0], [1], [0, 0, 1, 1], [], []>} : vector<8x128xf32>, vector<128x128xf32>, vector<8x128xf32> -> vector<8x128xf32>
    %c2_129 = arith.constant 2 : index
    %c0_130 = arith.constant 0 : index
    %c0_131 = arith.constant 0 : index
    %162 = vector.load %arg9[%c2_129, %c0_130, %c0_131] : memref<4x1x128xf32, #tpu.memory_space<vmem>>, vector<1x1x128xf32>
    %163 = vector.shape_cast %162 : vector<1x1x128xf32> to vector<1x128xf32>
    %164 = vector.broadcast %163 : vector<1x128xf32> to vector<8x128xf32>
    %165 = arith.addf %161, %164 : vector<8x128xf32>
    %cst_132 = arith.constant 0.000000e+00 : f32
    %166 = vector.broadcast %cst_132 : f32 to vector<8x128xf32>
    %167 = arith.maximumf %165, %166 : vector<8x128xf32>
    %c2_133 = arith.constant 2 : index
    %c0_134 = arith.constant 0 : index
    %c0_135 = arith.constant 0 : index
    %168 = vector.load %arg10[%c2_133, %c0_134, %c0_135] : memref<4x128x128xf32, #tpu.memory_space<vmem>>, vector<1x128x128xf32>
    %169 = vector.shape_cast %168 : vector<1x128x128xf32> to vector<128x128xf32>
    %cst_136 = arith.constant dense<0.000000e+00> : vector<8x128xf32>
    %170 = tpu.matmul %167, %169, %cst_136 {dimension_numbers = #tpu.dot_dimension_numbers<[1], [0], [0], [1], [0, 0, 1, 1], [], []>} : vector<8x128xf32>, vector<128x128xf32>, vector<8x128xf32> -> vector<8x128xf32>
    %c2_137 = arith.constant 2 : index
    %c0_138 = arith.constant 0 : index
    %c0_139 = arith.constant 0 : index
    %171 = vector.load %arg11[%c2_137, %c0_138, %c0_139] : memref<4x1x128xf32, #tpu.memory_space<vmem>>, vector<1x1x128xf32>
    %172 = vector.shape_cast %171 : vector<1x1x128xf32> to vector<1x128xf32>
    %173 = vector.broadcast %172 : vector<1x128xf32> to vector<8x128xf32>
    %174 = arith.addf %170, %173 : vector<8x128xf32>
    %cst_140 = arith.constant 0.000000e+00 : f32
    %175 = vector.broadcast %cst_140 : f32 to vector<8x128xf32>
    %176 = arith.maximumf %174, %175 : vector<8x128xf32>
    %c2_141 = arith.constant 2 : index
    %c0_142 = arith.constant 0 : index
    %c0_143 = arith.constant 0 : index
    %177 = vector.load %arg12[%c2_141, %c0_142, %c0_143] : memref<4x128x128xf32, #tpu.memory_space<vmem>>, vector<1x128x128xf32>
    %178 = vector.shape_cast %177 : vector<1x128x128xf32> to vector<128x128xf32>
    %cst_144 = arith.constant dense<0.000000e+00> : vector<8x128xf32>
    %179 = tpu.matmul %176, %178, %cst_144 {dimension_numbers = #tpu.dot_dimension_numbers<[1], [0], [0], [1], [0, 0, 1, 1], [], []>} : vector<8x128xf32>, vector<128x128xf32>, vector<8x128xf32> -> vector<8x128xf32>
    %c2_145 = arith.constant 2 : index
    %c0_146 = arith.constant 0 : index
    %c0_147 = arith.constant 0 : index
    %180 = vector.load %arg13[%c2_145, %c0_146, %c0_147] : memref<4x1x128xf32, #tpu.memory_space<vmem>>, vector<1x1x128xf32>
    %181 = vector.shape_cast %180 : vector<1x1x128xf32> to vector<1x128xf32>
    %182 = vector.broadcast %181 : vector<1x128xf32> to vector<8x128xf32>
    %183 = arith.addf %179, %182 : vector<8x128xf32>
    %184 = math.exp %158 : vector<8x128xf32>
    %185 = arith.mulf %126, %184 : vector<8x128xf32>
    %186 = arith.addf %185, %183 : vector<8x128xf32>
    %187 = vector.broadcast %130 : vector<1x128xf32> to vector<8x128xf32>
    %188 = arith.mulf %187, %186 : vector<8x128xf32>
    %189 = arith.addf %132, %188 : vector<8x128xf32>
    %c3 = arith.constant 3 : index
    %c0_148 = arith.constant 0 : index
    %c0_149 = arith.constant 0 : index
    %190 = vector.load %arg1[%c3, %c0_148, %c0_149] : memref<4x1x128xf32, #tpu.memory_space<vmem>>, vector<1x1x128xf32>
    %191 = vector.shape_cast %190 : vector<1x1x128xf32> to vector<1x128xf32>
    %cst_150 = arith.constant 1.000000e+00 : f32
    %192 = vector.broadcast %cst_150 : f32 to vector<1x128xf32>
    %193 = arith.subf %192, %191 : vector<1x128xf32>
    %194 = vector.broadcast %191 : vector<1x128xf32> to vector<8x128xf32>
    %195 = arith.mulf %194, %189 : vector<8x128xf32>
    %c3_151 = arith.constant 3 : index
    %c0_152 = arith.constant 0 : index
    %c0_153 = arith.constant 0 : index
    %196 = vector.load %arg2[%c3_151, %c0_152, %c0_153] : memref<4x128x128xf32, #tpu.memory_space<vmem>>, vector<1x128x128xf32>
    %197 = vector.shape_cast %196 : vector<1x128x128xf32> to vector<128x128xf32>
    %cst_154 = arith.constant dense<0.000000e+00> : vector<8x128xf32>
    %198 = tpu.matmul %195, %197, %cst_154 {dimension_numbers = #tpu.dot_dimension_numbers<[1], [0], [0], [1], [0, 0, 1, 1], [], []>} : vector<8x128xf32>, vector<128x128xf32>, vector<8x128xf32> -> vector<8x128xf32>
    %c3_155 = arith.constant 3 : index
    %c0_156 = arith.constant 0 : index
    %c0_157 = arith.constant 0 : index
    %199 = vector.load %arg3[%c3_155, %c0_156, %c0_157] : memref<4x1x128xf32, #tpu.memory_space<vmem>>, vector<1x1x128xf32>
    %200 = vector.shape_cast %199 : vector<1x1x128xf32> to vector<1x128xf32>
    %201 = vector.broadcast %200 : vector<1x128xf32> to vector<8x128xf32>
    %202 = arith.addf %198, %201 : vector<8x128xf32>
    %cst_158 = arith.constant 0.000000e+00 : f32
    %203 = vector.broadcast %cst_158 : f32 to vector<8x128xf32>
    %204 = arith.maximumf %202, %203 : vector<8x128xf32>
    %c3_159 = arith.constant 3 : index
    %c0_160 = arith.constant 0 : index
    %c0_161 = arith.constant 0 : index
    %205 = vector.load %arg4[%c3_159, %c0_160, %c0_161] : memref<4x128x128xf32, #tpu.memory_space<vmem>>, vector<1x128x128xf32>
    %206 = vector.shape_cast %205 : vector<1x128x128xf32> to vector<128x128xf32>
    %cst_162 = arith.constant dense<0.000000e+00> : vector<8x128xf32>
    %207 = tpu.matmul %204, %206, %cst_162 {dimension_numbers = #tpu.dot_dimension_numbers<[1], [0], [0], [1], [0, 0, 1, 1], [], []>} : vector<8x128xf32>, vector<128x128xf32>, vector<8x128xf32> -> vector<8x128xf32>
    %c3_163 = arith.constant 3 : index
    %c0_164 = arith.constant 0 : index
    %c0_165 = arith.constant 0 : index
    %208 = vector.load %arg5[%c3_163, %c0_164, %c0_165] : memref<4x1x128xf32, #tpu.memory_space<vmem>>, vector<1x1x128xf32>
    %209 = vector.shape_cast %208 : vector<1x1x128xf32> to vector<1x128xf32>
    %210 = vector.broadcast %209 : vector<1x128xf32> to vector<8x128xf32>
    %211 = arith.addf %207, %210 : vector<8x128xf32>
    %cst_166 = arith.constant 0.000000e+00 : f32
    %212 = vector.broadcast %cst_166 : f32 to vector<8x128xf32>
    %213 = arith.maximumf %211, %212 : vector<8x128xf32>
    %c3_167 = arith.constant 3 : index
    %c0_168 = arith.constant 0 : index
    %c0_169 = arith.constant 0 : index
    %214 = vector.load %arg6[%c3_167, %c0_168, %c0_169] : memref<4x128x128xf32, #tpu.memory_space<vmem>>, vector<1x128x128xf32>
    %215 = vector.shape_cast %214 : vector<1x128x128xf32> to vector<128x128xf32>
    %cst_170 = arith.constant dense<0.000000e+00> : vector<8x128xf32>
    %216 = tpu.matmul %213, %215, %cst_170 {dimension_numbers = #tpu.dot_dimension_numbers<[1], [0], [0], [1], [0, 0, 1, 1], [], []>} : vector<8x128xf32>, vector<128x128xf32>, vector<8x128xf32> -> vector<8x128xf32>
    %c3_171 = arith.constant 3 : index
    %c0_172 = arith.constant 0 : index
    %c0_173 = arith.constant 0 : index
    %217 = vector.load %arg7[%c3_171, %c0_172, %c0_173] : memref<4x1x128xf32, #tpu.memory_space<vmem>>, vector<1x1x128xf32>
    %218 = vector.shape_cast %217 : vector<1x1x128xf32> to vector<1x128xf32>
    %219 = vector.broadcast %218 : vector<1x128xf32> to vector<8x128xf32>
    %220 = arith.addf %216, %219 : vector<8x128xf32>
    %221 = math.tanh %220 : vector<8x128xf32>
    %c3_174 = arith.constant 3 : index
    %c0_175 = arith.constant 0 : index
    %c0_176 = arith.constant 0 : index
    %222 = vector.load %arg8[%c3_174, %c0_175, %c0_176] : memref<4x128x128xf32, #tpu.memory_space<vmem>>, vector<1x128x128xf32>
    %223 = vector.shape_cast %222 : vector<1x128x128xf32> to vector<128x128xf32>
    %cst_177 = arith.constant dense<0.000000e+00> : vector<8x128xf32>
    %224 = tpu.matmul %195, %223, %cst_177 {dimension_numbers = #tpu.dot_dimension_numbers<[1], [0], [0], [1], [0, 0, 1, 1], [], []>} : vector<8x128xf32>, vector<128x128xf32>, vector<8x128xf32> -> vector<8x128xf32>
    %c3_178 = arith.constant 3 : index
    %c0_179 = arith.constant 0 : index
    %c0_180 = arith.constant 0 : index
    %225 = vector.load %arg9[%c3_178, %c0_179, %c0_180] : memref<4x1x128xf32, #tpu.memory_space<vmem>>, vector<1x1x128xf32>
    %226 = vector.shape_cast %225 : vector<1x1x128xf32> to vector<1x128xf32>
    %227 = vector.broadcast %226 : vector<1x128xf32> to vector<8x128xf32>
    %228 = arith.addf %224, %227 : vector<8x128xf32>
    %cst_181 = arith.constant 0.000000e+00 : f32
    %229 = vector.broadcast %cst_181 : f32 to vector<8x128xf32>
    %230 = arith.maximumf %228, %229 : vector<8x128xf32>
    %c3_182 = arith.constant 3 : index
    %c0_183 = arith.constant 0 : index
    %c0_184 = arith.constant 0 : index
    %231 = vector.load %arg10[%c3_182, %c0_183, %c0_184] : memref<4x128x128xf32, #tpu.memory_space<vmem>>, vector<1x128x128xf32>
    %232 = vector.shape_cast %231 : vector<1x128x128xf32> to vector<128x128xf32>
    %cst_185 = arith.constant dense<0.000000e+00> : vector<8x128xf32>
    %233 = tpu.matmul %230, %232, %cst_185 {dimension_numbers = #tpu.dot_dimension_numbers<[1], [0], [0], [1], [0, 0, 1, 1], [], []>} : vector<8x128xf32>, vector<128x128xf32>, vector<8x128xf32> -> vector<8x128xf32>
    %c3_186 = arith.constant 3 : index
    %c0_187 = arith.constant 0 : index
    %c0_188 = arith.constant 0 : index
    %234 = vector.load %arg11[%c3_186, %c0_187, %c0_188] : memref<4x1x128xf32, #tpu.memory_space<vmem>>, vector<1x1x128xf32>
    %235 = vector.shape_cast %234 : vector<1x1x128xf32> to vector<1x128xf32>
    %236 = vector.broadcast %235 : vector<1x128xf32> to vector<8x128xf32>
    %237 = arith.addf %233, %236 : vector<8x128xf32>
    %cst_189 = arith.constant 0.000000e+00 : f32
    %238 = vector.broadcast %cst_189 : f32 to vector<8x128xf32>
    %239 = arith.maximumf %237, %238 : vector<8x128xf32>
    %c3_190 = arith.constant 3 : index
    %c0_191 = arith.constant 0 : index
    %c0_192 = arith.constant 0 : index
    %240 = vector.load %arg12[%c3_190, %c0_191, %c0_192] : memref<4x128x128xf32, #tpu.memory_space<vmem>>, vector<1x128x128xf32>
    %241 = vector.shape_cast %240 : vector<1x128x128xf32> to vector<128x128xf32>
    %cst_193 = arith.constant dense<0.000000e+00> : vector<8x128xf32>
    %242 = tpu.matmul %239, %241, %cst_193 {dimension_numbers = #tpu.dot_dimension_numbers<[1], [0], [0], [1], [0, 0, 1, 1], [], []>} : vector<8x128xf32>, vector<128x128xf32>, vector<8x128xf32> -> vector<8x128xf32>
    %c3_194 = arith.constant 3 : index
    %c0_195 = arith.constant 0 : index
    %c0_196 = arith.constant 0 : index
    %243 = vector.load %arg13[%c3_194, %c0_195, %c0_196] : memref<4x1x128xf32, #tpu.memory_space<vmem>>, vector<1x1x128xf32>
    %244 = vector.shape_cast %243 : vector<1x1x128xf32> to vector<1x128xf32>
    %245 = vector.broadcast %244 : vector<1x128xf32> to vector<8x128xf32>
    %246 = arith.addf %242, %245 : vector<8x128xf32>
    %247 = math.exp %221 : vector<8x128xf32>
    %248 = arith.mulf %189, %247 : vector<8x128xf32>
    %249 = arith.addf %248, %246 : vector<8x128xf32>
    %250 = vector.broadcast %193 : vector<1x128xf32> to vector<8x128xf32>
    %251 = arith.mulf %250, %249 : vector<8x128xf32>
    %252 = arith.addf %195, %251 : vector<8x128xf32>
    %c0_197 = arith.constant 0 : index
    %c0_198 = arith.constant 0 : index
    %253 = vector.load %arg15[%c0_197, %c0_198] : memref<8x128xf32, #tpu.memory_space<vmem>>, vector<8x128xf32>
    tpu.vector_store %arg15[%c0_197, %c0_198], %252 {strides = array<i32>} : memref<8x128xf32, #tpu.memory_space<vmem>>, vector<8x128xf32>,
    return
  }
  func.func @transform_0(%arg0: i32) -> (i32, i32, i32) {
    %c0_i32 = arith.constant 0 : i32
    %c0_i32_0 = arith.constant 0 : i32
    %c0_i32_1 = arith.constant 0 : i32
    %c0_i32_2 = arith.constant 0 : i32
    return %c0_i32, %c0_i32_0, %c0_i32_1 : i32, i32, i32
  }
  func.func @transform_1(%arg0: i32) -> (i32, i32, i32) {
    %c0_i32 = arith.constant 0 : i32
    %c0_i32_0 = arith.constant 0 : i32
    %c0_i32_1 = arith.constant 0 : i32
    %c0_i32_2 = arith.constant 0 : i32
    return %c0_i32, %c0_i32_0, %c0_i32_1 : i32, i32, i32
  }
  func.func @transform_2(%arg0: i32) -> (i32, i32, i32) {
    %c0_i32 = arith.constant 0 : i32
    %c0_i32_0 = arith.constant 0 : i32
    %c0_i32_1 = arith.constant 0 : i32
    %c0_i32_2 = arith.constant 0 : i32
    return %c0_i32, %c0_i32_0, %c0_i32_1 : i32, i32, i32
  }
  func.func @transform_3(%arg0: i32) -> (i32, i32, i32) {
    %c0_i32 = arith.constant 0 : i32
    %c0_i32_0 = arith.constant 0 : i32
    %c0_i32_1 = arith.constant 0 : i32
    %c0_i32_2 = arith.constant 0 : i32
    return %c0_i32, %c0_i32_0, %c0_i32_1 : i32, i32, i32
  }
  func.func @transform_4(%arg0: i32) -> (i32, i32, i32) {
    %c0_i32 = arith.constant 0 : i32
    %c0_i32_0 = arith.constant 0 : i32
    %c0_i32_1 = arith.constant 0 : i32
    %c0_i32_2 = arith.constant 0 : i32
    return %c0_i32, %c0_i32_0, %c0_i32_1 : i32, i32, i32
  }
  func.func @transform_5(%arg0: i32) -> (i32, i32, i32) {
    %c0_i32 = arith.constant 0 : i32
    %c0_i32_0 = arith.constant 0 : i32
    %c0_i32_1 = arith.constant 0 : i32
    %c0_i32_2 = arith.constant 0 : i32
    return %c0_i32, %c0_i32_0, %c0_i32_1 : i32, i32, i32
  }
  func.func @transform_6(%arg0: i32) -> (i32, i32, i32) {
    %c0_i32 = arith.constant 0 : i32
    %c0_i32_0 = arith.constant 0 : i32
    %c0_i32_1 = arith.constant 0 : i32
    %c0_i32_2 = arith.constant 0 : i32
    return %c0_i32, %c0_i32_0, %c0_i32_1 : i32, i32, i32
  }
  func.func @transform_7(%arg0: i32) -> (i32, i32, i32) {
    %c0_i32 = arith.constant 0 : i32
    %c0_i32_0 = arith.constant 0 : i32
    %c0_i32_1 = arith.constant 0 : i32
    %c0_i32_2 = arith.constant 0 : i32
    return %c0_i32, %c0_i32_0, %c0_i32_1 : i32, i32, i32
  }
  func.func @transform_8(%arg0: i32) -> (i32, i32, i32) {
    %c0_i32 = arith.constant 0 : i32
    %c0_i32_0 = arith.constant 0 : i32
    %c0_i32_1 = arith.constant 0 : i32
    %c0_i32_2 = arith.constant 0 : i32
    return %c0_i32, %c0_i32_0, %c0_i32_1 : i32, i32, i32
  }
  func.func @transform_9(%arg0: i32) -> (i32, i32, i32) {
    %c0_i32 = arith.constant 0 : i32
    %c0_i32_0 = arith.constant 0 : i32
    %c0_i32_1 = arith.constant 0 : i32
    %c0_i32_2 = arith.constant 0 : i32
    return %c0_i32, %c0_i32_0, %c0_i32_1 : i32, i32, i32
  }
  func.func @transform_10(%arg0: i32) -> (i32, i32, i32) {
    %c0_i32 = arith.constant 0 : i32
    %c0_i32_0 = arith.constant 0 : i32
    %c0_i32_1 = arith.constant 0 : i32
    %c0_i32_2 = arith.constant 0 : i32
    return %c0_i32, %c0_i32_0, %c0_i32_1 : i32, i32, i32
  }
  func.func @transform_11(%arg0: i32) -> (i32, i32, i32) {
    %c0_i32 = arith.constant 0 : i32
    %c0_i32_0 = arith.constant 0 : i32
    %c0_i32_1 = arith.constant 0 : i32
    %c0_i32_2 = arith.constant 0 : i32
    return %c0_i32, %c0_i32_0, %c0_i32_1 : i32, i32, i32
  }
  func.func @transform_12(%arg0: i32) -> (i32, i32, i32) {
    %c0_i32 = arith.constant 0 : i32
    %c0_i32_0 = arith.constant 0 : i32
    %c0_i32_1 = arith.constant 0 : i32
    %c0_i32_2 = arith.constant 0 : i32
    return %c0_i32, %c0_i32_0, %c0_i32_1 : i32, i32, i32
  }
  func.func @transform_13(%arg0: i32) -> (i32, i32) {
    %c0_i32 = arith.constant 0 : i32
    %c0_i32_0 = arith.constant 0 : i32
    return %arg0, %c0_i32 : i32, i32
  }
  func.func @transform_14(%arg0: i32) -> (i32, i32) {
    %c0_i32 = arith.constant 0 : i32
    %c0_i32_0 = arith.constant 0 : i32
    return %arg0, %c0_i32 : i32, i32
  }
}

</mosaic_0001>

<bundles_post_ra>
// kernel: tpu_custom_call.1
= control target key start
LH: loop header
LB: loop body
LE: loop exit
PB: predicated region body
PF: predicated region fallthrough
CT: control target
= control target key end

     0   :  { %19 = vsyncpa [#allocation3], 0  ;;  %s5271_s0 = inlined_call_operand.vmem [shape: f32[4,1,128], index: 0, kind: input, shape index: {}]   ;;  %s5272_s1 = inlined_call_operand.hbm [shape: f32[4,128,128], index: 1, kind: input, shape index: {}]   ;;  %s5273_s2 = inlined_call_operand.vmem [shape: f32[4,1,128], index: 2, kind: input, shape index: {}]   ;;  %s5274_s3 = inlined_call_operand.hbm [shape: f32[4,128,128], index: 3, kind: input, shape index: {}]   ;;  %s5275_s4 = inlined_call_operand.vmem [shape: f32[4,1,128], index: 4, kind: input, shape index: {}]   ;;  %s5276_s5 = inlined_call_operand.hbm [shape: f32[4,128,128], index: 5, kind: input, shape index: {}]   ;;  %s5277_s6 = inlined_call_operand.vmem [shape: f32[4,1,128], index: 6, kind: input, shape index: {}]   ;;  %s5278_s7 = inlined_call_operand.hbm [shape: f32[4,128,128], index: 7, kind: input, shape index: {}]   ;;  %s5279_s8 = inlined_call_operand.vmem [shape: f32[4,1,128], index: 8, kind: input, shape index: {}]   ;;  %s5280_s9 = inlined_call_operand.hbm [shape: f32[4,128,128], index: 9, kind: input, shape index: {}]   ;;  %s5281_s10 = inlined_call_operand.vmem [shape: f32[4,1,128], index: 10, kind: input, shape index: {}]   ;;  %s5282_s11 = inlined_call_operand.hbm [shape: f32[4,128,128], index: 11, kind: input, shape index: {}]   ;;  %s5283_s12 = inlined_call_operand.hbm [shape: f32[4,1,128], index: 12, kind: input, shape index: {}]   ;;  %s5284_s13 = inlined_call_operand.hbm [shape: f32[8,128], index: 13, kind: input, shape index: {}, may-alias: {13,14}]   ;;  %s5285_s14 = inlined_call_operand.hbm [shape: f32[8,128], index: 14, kind: output, shape index: {}, may-alias: {13,14}]  }
   0x1   :  { %20 = vsyncpa [#allocation6], 0 }
   0x2   :  { %21 = vsyncpa [#allocation9], 0 }
   0x3   :  { %22 = vsyncpa [#allocation12], 0 }
   0x4   :  { %23 = vsyncpa [#allocation15], 0 }
   0x5   :  { %24 = vsyncpa [#allocation4], 0  ;;  %s4659_s29 = smov [#allocation5]   ;;  %s4660_s15 = smov [#allocation8]  }
   0x6   :  { %s46_s30 = sshll.u32 %s4659_s29, 4  ;;  %s74_s16 = sshll.u32 %s4660_s15, 4  ;;  %s47_s30 = int_to_ptr.vmem [resolvable:$true] %s46_s30  ;;  %s4750_s16 = int_to_ptr.vmem [resolvable:$true] %s74_s16 }
   0x7   :  { %s4449_s19 = scalar_lea.hbm %s5274_s3, 8192 }
   0x8   :  { %p4450_p0 = scmp.ne.s32.totalorder %s5274_s3, %s4449_s19  ;;  %p4453_p1 = scmp.lt.u32.totalorder %s4449_s19, %s5274_s3 }
   0xa   :  { %p4455_p2 = pnand %p4453_p1, %p4450_p0 }
   0xc   :  { %4458 = shalt.err (!%p4455_p2)
}
   0xd   :  { %s4459_s24 = scalar_lea.vmem %s47_s30, 8192  ;;  %p4464_p4 = scmp.lt.s32.totalorder %s47_s30, %s47_s30 }
   0xe   :  { %p4460_p3 = scmp.ne.s32.totalorder %s47_s30, %s4459_s24  ;;  %p4465_p5 = scmp.lt.s32.totalorder %s4459_s24, %s4459_s24 }
  0x10   :  { %p4466_p6 = por %p4465_p5, %p4464_p4 }
  0x12   :  { %p4467_p7 = pnand %p4466_p6, %p4460_p3 }
  0x14   :  { %4470 = shalt.err (!%p4467_p7)
}
  0x15   :  { %s4661_s25 = smov 128   ;;  %s4662_s26 = smov 8  }
  0x16   :  { %52 = dma.hbm_to_vmem [thread:$0]  %s5274_s3, 8192, %s47_s30, [#allocation6], %s4661_s25, %s4661_s25, %s4662_s26  }
  0x17   :  { %s4471_s17 = scalar_lea.hbm %s5278_s7, 8192 }
  0x18   :  { %p4472_p8 = scmp.ne.s32.totalorder %s5278_s7, %s4471_s17  ;;  %p4475_p9 = scmp.lt.u32.totalorder %s4471_s17, %s5278_s7 }
  0x1a   :  { %p4477_p10 = pnand %p4475_p9, %p4472_p8 }
  0x1c   :  { %4480 = shalt.err (!%p4477_p10)
}
  0x1d   :  { %s4481_s22 = scalar_lea.vmem %s4750_s16, 8192  ;;  %p4486_p12 = scmp.lt.s32.totalorder %s4750_s16, %s4750_s16 }
  0x1e   :  { %p4482_p11 = scmp.ne.s32.totalorder %s4750_s16, %s4481_s22  ;;  %p4487_p13 = scmp.lt.s32.totalorder %s4481_s22, %s4481_s22 }
  0x20   :  { %p4488_p0 = por %p4487_p13, %p4486_p12 }
  0x22   :  { %p4489_p1 = pnand %p4488_p0, %p4482_p11 }
  0x24   :  { %4492 = shalt.err (!%p4489_p1)
}
  0x25   :  { %80 = dma.hbm_to_vmem [thread:$0]  %s5278_s7, 8192, %s4750_s16, [#allocation9], %s4661_s25, %s4661_s25, %s4662_s26  }
  0x26   :  { %s4663_s23 = smov [#allocation11]   ;;  %s4664_s27 = smov [#allocation2]  }
  0x27   :  { %s102_s24 = sshll.u32 %s4663_s23, 4  ;;  %s32_s28 = sshll.u32 %s4664_s27, 4  ;;  %s103_s24 = int_to_ptr.vmem [resolvable:$true] %s102_s24  ;;  %s4787_s28 = int_to_ptr.vmem [resolvable:$true] %s32_s28 }
  0x28   :  { %s4493_s17 = scalar_lea.hbm %s5282_s11, 8192 }
  0x29   :  { %p4494_p2 = scmp.ne.s32.totalorder %s5282_s11, %s4493_s17  ;;  %p4497_p3 = scmp.lt.u32.totalorder %s4493_s17, %s5282_s11 }
  0x2b   :  { %p4499_p4 = pnand %p4497_p3, %p4494_p2 }
  0x2d   :  { %4502 = shalt.err (!%p4499_p4)
}
  0x2e   :  { %s4503_s7 = scalar_lea.vmem %s103_s24, 8192  ;;  %p4508_p6 = scmp.lt.s32.totalorder %s103_s24, %s103_s24 }
  0x2f   :  { %p4504_p5 = scmp.ne.s32.totalorder %s103_s24, %s4503_s7  ;;  %p4509_p7 = scmp.lt.s32.totalorder %s4503_s7, %s4503_s7 }
  0x31   :  { %p4510_p8 = por %p4509_p7, %p4508_p6 }
  0x33   :  { %p4511_p9 = pnand %p4510_p8, %p4504_p5 }
  0x35   :  { %4514 = shalt.err (!%p4511_p9)
}
  0x36   :  { %108 = dma.hbm_to_vmem [thread:$0]  %s5282_s11, 8192, %s103_s24, [#allocation12], %s4661_s25, %s4661_s25, %s4662_s26  }
  0x37   :  { %s4515_s23 = scalar_lea.hbm %s5272_s1, 8192 }
  0x38   :  { %p4516_p10 = scmp.ne.s32.totalorder %s5272_s1, %s4515_s23  ;;  %p4519_p11 = scmp.lt.u32.totalorder %s4515_s23, %s5272_s1 }
  0x3a   :  { %p4521_p12 = pnand %p4519_p11, %p4516_p10 }
  0x3c   :  { %4524 = shalt.err (!%p4521_p12)
}
  0x3d   :  { %s4525_s18 = scalar_lea.vmem %s4787_s28, 8192  ;;  %p4530_p0 = scmp.lt.s32.totalorder %s4787_s28, %s4787_s28 }
  0x3e   :  { %p4526_p13 = scmp.ne.s32.totalorder %s4787_s28, %s4525_s18  ;;  %p4531_p1 = scmp.lt.s32.totalorder %s4525_s18, %s4525_s18 }
  0x40   :  { %p4532_p2 = por %p4531_p1, %p4530_p0 }
  0x42   :  { %p4533_p3 = pnand %p4532_p2, %p4526_p13 }
  0x44   :  { %4536 = shalt.err (!%p4533_p3)
}
  0x45   :  { %38 = dma.hbm_to_vmem [thread:$0]  %s5272_s1, 8192, %s4787_s28, [#allocation3], %s4661_s25, %s4661_s25, %s4662_s26  }
  0x46   :  { %s4665_s19 = smov [#allocation7]   ;;  %s4666_s21 = smov [#allocation10]  }
  0x47   :  { %s60_s20 = sshll.u32 %s4665_s19, 4  ;;  %s88_s7 = sshll.u32 %s4666_s21, 4  ;;  %s61_s20 = int_to_ptr.vmem [resolvable:$true] %s60_s20  ;;  %s4824_s7 = int_to_ptr.vmem [resolvable:$true] %s88_s7 }
  0x48   :  { %s4537_s3 = scalar_lea.hbm %s5276_s5, 8192 }
  0x49   :  { %p4538_p4 = scmp.ne.s32.totalorder %s5276_s5, %s4537_s3  ;;  %p4541_p5 = scmp.lt.u32.totalorder %s4537_s3, %s5276_s5 }
  0x4b   :  { %p4543_p6 = pnand %p4541_p5, %p4538_p4 }
  0x4d   :  { %4546 = shalt.err (!%p4543_p6)
}
  0x4e   :  { %s4547_s1 = scalar_lea.vmem %s61_s20, 8192  ;;  %p4552_p8 = scmp.lt.s32.totalorder %s61_s20, %s61_s20 }
  0x4f   :  { %p4548_p7 = scmp.ne.s32.totalorder %s61_s20, %s4547_s1  ;;  %p4553_p9 = scmp.lt.s32.totalorder %s4547_s1, %s4547_s1 }
  0x51   :  { %p4554_p10 = por %p4553_p9, %p4552_p8 }
  0x53   :  { %p4555_p11 = pnand %p4554_p10, %p4548_p7 }
  0x55   :  { %4558 = shalt.err (!%p4555_p11)
}
  0x56   :  { %66 = dma.hbm_to_vmem [thread:$0]  %s5276_s5, 8192, %s61_s20, [#allocation6], %s4661_s25, %s4661_s25, %s4662_s26  }
  0x57   :  { %s4559_s11 = scalar_lea.hbm %s5280_s9, 8192 }
  0x58   :  { %p4560_p12 = scmp.ne.s32.totalorder %s5280_s9, %s4559_s11  ;;  %p4563_p13 = scmp.lt.u32.totalorder %s4559_s11, %s5280_s9 }
  0x5a   :  { %p4565_p0 = pnand %p4563_p13, %p4560_p12 }
  0x5c   :  { %4568 = shalt.err (!%p4565_p0)
}
  0x5d   :  { %s4569_s22 = scalar_lea.vmem %s4824_s7, 8192  ;;  %p4574_p2 = scmp.lt.s32.totalorder %s4824_s7, %s4824_s7 }
  0x5e   :  { %p4570_p1 = scmp.ne.s32.totalorder %s4824_s7, %s4569_s22  ;;  %p4575_p3 = scmp.lt.s32.totalorder %s4569_s22, %s4569_s22 }
  0x60   :  { %p4576_p4 = por %p4575_p3, %p4574_p2 }
  0x62   :  { %p4577_p5 = pnand %p4576_p4, %p4570_p1 }
  0x64   :  { %4580 = shalt.err (!%p4577_p5)
}
  0x65   :  { %94 = dma.hbm_to_vmem [thread:$0]  %s5280_s9, 8192, %s4824_s7, [#allocation9], %s4661_s25, %s4661_s25, %s4662_s26  }
  0x66   :  { %s4667_s3 = smov [#allocation13]   ;;  %s4581_s29 = scalar_lea.hbm %s5283_s12, 64 }
  0x67   :  { %s114_s30 = sshll.u32 %s4667_s3, 4  ;;  %p4582_p6 = scmp.ne.s32.totalorder %s5283_s12, %s4581_s29  ;;  %s115_s30 = int_to_ptr.vmem [resolvable:$true] %s114_s30 }
  0x68   :  { %p4585_p7 = scmp.lt.u32.totalorder %s4581_s29, %s5283_s12 }
  0x6a   :  { %p4587_p8 = pnand %p4585_p7, %p4582_p6 }
  0x6c   :  { %4590 = shalt.err (!%p4587_p8)
}
  0x6d   :  { %s4591_s18 = scalar_lea.vmem %s115_s30, 64  ;;  %p4596_p10 = scmp.lt.s32.totalorder %s115_s30, %s115_s30 }
  0x6e   :  { %p4592_p9 = scmp.ne.s32.totalorder %s115_s30, %s4591_s18  ;;  %p4597_p11 = scmp.lt.s32.totalorder %s4591_s18, %s4591_s18 }
  0x70   :  { %p4598_p12 = por %p4597_p11, %p4596_p10 }
  0x72   :  { %p4599_p13 = pnand %p4598_p12, %p4592_p9 }
  0x74   :  { %4602 = shalt.err (!%p4599_p13)
}
  0x75   :  { %s4668_s9 = smov 16   ;;  %s4669_s25 = smov 1  }
  0x76   :  { %120 = dma.hbm_to_vmem [thread:$0]  %s5283_s12, 64, %s115_s30, [#allocation12], %s4668_s9, %s4668_s9, %s4669_s25  }
  0x77   :  { %s4670_s11 = smov [#allocation14]   ;;  %s4603_s16 = scalar_lea.hbm %s5284_s13, 128 }
  0x78   :  { %s127_s24 = sshll.u32 %s4670_s11, 4  ;;  %p4604_p0 = scmp.ne.s32.totalorder %s5284_s13, %s4603_s16  ;;  %s128_s24 = int_to_ptr.vmem [resolvable:$true] %s127_s24 }
  0x79   :  { %p4607_p1 = scmp.lt.u32.totalorder %s4603_s16, %s5284_s13 }
  0x7b   :  { %p4609_p2 = pnand %p4607_p1, %p4604_p0 }
  0x7d   :  { %4612 = shalt.err (!%p4609_p2)
}
  0x7e   :  { %s4613_s23 = scalar_lea.vmem %s128_s24, 128  ;;  %p4618_p4 = scmp.lt.s32.totalorder %s128_s24, %s128_s24 }
  0x7f   :  { %p4614_p3 = scmp.ne.s32.totalorder %s128_s24, %s4613_s23  ;;  %p4619_p5 = scmp.lt.s32.totalorder %s4613_s23, %s4613_s23 }
  0x81   :  { %p4620_p6 = por %p4619_p5, %p4618_p4 }
  0x83   :  { %p4621_p7 = pnand %p4620_p6, %p4614_p3 }
  0x85   :  { %4624 = shalt.err (!%p4621_p7)
}
  0x86   :  { %130 = dma.hbm_to_vmem [thread:$0]  %s5284_s13, 128, %s128_s24, [#allocation15]  }
  0x87   :  { %4647 = dma.done.wait [#allocation3], 8192  }
  0x88   :  { %4648 = vsyncadd [#allocation3], 4294959104 }
  0x89   :  { %4649 = dma.done.wait [#allocation6], 16384  }
  0x8a   :  { %4650 = vsyncadd [#allocation6], 4294950912 }
  0x8b   :  { %4651 = dma.done.wait [#allocation9], 16384  }
  0x8c   :  { %4652 = vsyncadd [#allocation9], 4294950912 }
  0x8d   :  { %4653 = dma.done.wait [#allocation12], 8256  }
  0x8e   :  { %4654 = vsyncadd [#allocation12], 4294959040 }
  0x8f   :  { %4655 = dma.done.wait [#allocation15], 128  }
  0x90   :  { %4656 = vsyncadd [#allocation15], 4294967168  ;;  %v4671_v0 = vmov 0.0|0.0   ;;  %vm4672_vm0 = vmmov 0   ;;  %v4673_v1 = vmov 0.0   ;;  %v165_v2 = vld [vmem:[#allocation2] sm:$0xff]  ;;  %v159_v25 = vlaneseq }
  0x91   :  { %3841 = vmatprep.subr.bf16.mxu0 %v4671_v0  ;;  %3033 = vmatprep.mubr.msk.f32.mxu0 %vm4672_vm0, %v4673_v1  ;;  %v166_v3 = vld [vmem:[#allocation2 + $0x8] sm:$0xff]  ;;  %v167_v4 = vld [vmem:[#allocation2 + $0x10] sm:$0xff]  ;;  %v168_v6 = vld [vmem:[#allocation2 + $0x18] sm:$0xff] }
  0x92   :  { %3865 = vmatprep.subr.bf16.mxu1 %v4671_v0  ;;  %3068 = vmatprep.mubr.msk.f32.mxu1 %vm4672_vm0, %v4673_v1  ;;  %v3842_v5 = vpack.c.bf16 %v166_v3, %v165_v2  ;;  %v3845_v7 = vpack.c.bf16 %v168_v6, %v167_v4  ;;  %v169_v8 = vld [vmem:[#allocation2 + $0x20] sm:$0xff]  ;;  %v170_v9 = vld [vmem:[#allocation2 + $0x28] sm:$0xff]  ;;  %v261_v12 = vld [vmem:[#allocation5 + $0x10] sm:$0xff]  ;;  %v160_v32 = vshrl.u32 %v159_v25, 7 }
  0x93   :  { %v259_v10 = vld [vmem:[#allocation5] sm:$0xff]  ;;  %v260_v11 = vld [vmem:[#allocation5 + $0x8] sm:$0xff]  ;;  %v3848_v13 = vpack.c.bf16 %v170_v9, %v169_v8  ;;  %v262_v15 = vld [vmem:[#allocation5 + $0x18] sm:$0xff] }
  0x94   :  { %3843 = vmatpush3.bf16.msra.mxu0 %v3842_v5  ;;  %v3866_v14 = vpack.c.bf16 %v260_v11, %v259_v10  ;;  %v171_v16 = vld [vmem:[#allocation2 + $0x30] sm:$0xff]  ;;  %v172_v17 = vld [vmem:[#allocation2 + $0x38] sm:$0xff]  ;;  %v3869_v18 = vpack.c.bf16 %v262_v15, %v261_v12  ;;  %v263_v19 = vld [vmem:[#allocation5 + $0x20] sm:$0xff]  ;;  %v4899_v39 = vsub.s32 0, %v160_v32 }
  0x95   :  { %3844 = vmatprep.subr.bf16.mxu0 %v4671_v0  ;;  %v264_v20 = vld [vmem:[#allocation5 + $0x28] sm:$0xff]  ;;  %v3851_v21 = vpack.c.bf16 %v172_v17, %v171_v16  ;;  %v173_v22 = vld [vmem:[#allocation2 + $0x40] sm:$0xff]  ;;  %v265_v26 = vld [vmem:[#allocation5 + $0x30] sm:$0xff] }
  0x96   :  { %3867 = vmatpush3.bf16.msra.mxu1 %v3866_v14  ;;  %v174_v23 = vld [vmem:[#allocation2 + $0x48] sm:$0xff]  ;;  %v3872_v24 = vpack.c.bf16 %v264_v20, %v263_v19  ;;  %v266_v27 = vld [vmem:[#allocation5 + $0x38] sm:$0xff]  ;;  %v175_v29 = vld [vmem:[#allocation2 + $0x50] sm:$0xff] }
  0x97   :  { %3868 = vmatprep.subr.bf16.mxu1 %v4671_v0  ;;  %v3854_v28 = vpack.c.bf16 %v174_v23, %v173_v22  ;;  %v176_v30 = vld [vmem:[#allocation2 + $0x58] sm:$0xff]  ;;  %v3875_v31 = vpack.c.bf16 %v266_v27, %v265_v26  ;;  %v267_v33 = vld [vmem:[#allocation5 + $0x40] sm:$0xff]  ;;  %v268_v34 = vld [vmem:[#allocation5 + $0x48] sm:$0xff] }
  0x98   :  { %3846 = vmatpush3.bf16.msra.mxu0 %v3845_v7  ;;  %v3857_v35 = vpack.c.bf16 %v176_v30, %v175_v29  ;;  %v177_v36 = vld [vmem:[#allocation2 + $0x60] sm:$0xff]  ;;  %v178_v37 = vld [vmem:[#allocation2 + $0x68] sm:$0xff]  ;;  %v3878_v38 = vpack.c.bf16 %v268_v34, %v267_v33  ;;  %v269_v40 = vld [vmem:[#allocation5 + $0x50] sm:$0xff] }
  0x99   :  { %3847 = vmatprep.subr.bf16.mxu0 %v4671_v0  ;;  %v270_v41 = vld [vmem:[#allocation5 + $0x58] sm:$0xff]  ;;  %v3860_v42 = vpack.c.bf16 %v178_v37, %v177_v36  ;;  %v4905_v43 = vld [vmem:[%s5271_s0] sm:$0x1]  ;;  %v179_v44 = vld [vmem:[#allocation2 + $0x70] sm:$0xff] }
  0x9a   :  { %3870 = vmatpush3.bf16.msra.mxu1 %v3869_v18  ;;  %v180_v45 = vld [vmem:[#allocation2 + $0x78] sm:$0xff]  ;;  %v3881_v46 = vpack.c.bf16 %v270_v41, %v269_v40  ;;  %v162_v47 = vrot.slane %v4905_v43, %v4899_v39  ;;  %v271_v48 = vld [vmem:[#allocation5 + $0x60] sm:$0xff]  ;;  %v272_v49 = vld [vmem:[#allocation5 + $0x68] sm:$0xff] }
  0x9b   :  { %3871 = vmatprep.subr.bf16.mxu1 %v4671_v0  ;;  %v3863_v50 = vpack.c.bf16 %v180_v45, %v179_v44  ;;  %v4911_v51 = vld [vmem:[#allocation14] sm:$0xff]  ;;  %v3884_v52 = vpack.c.bf16 %v272_v49, %v271_v48  ;;  %v273_v54 = vld [vmem:[#allocation5 + $0x70] sm:$0xff]  ;;  %v274_v55 = vld [vmem:[#allocation5 + $0x78] sm:$0xff] }
  0x9c   :  { %3849 = vmatpush3.bf16.msra.mxu0 %v3848_v13  ;;  %v4915_v53 = vmul.f32 %v162_v47, %v4911_v51  ;;  %v3887_v56 = vpack.c.bf16 %v274_v55, %v273_v54  ;;  %v353_v57 = vld [vmem:[#allocation7] sm:$0xff]  ;;  %v354_v58 = vld [vmem:[#allocation7 + $0x8] sm:$0xff]  ;;  %v355_v59 = vld [vmem:[#allocation7 + $0x10] sm:$0xff] }
  0x9d   :  { %3850 = vmatprep.subr.bf16.mxu0 %v4671_v0  ;;  %v3890_v60 = vpack.c.bf16 %v354_v58, %v353_v57  ;;  %v356_v61 = vld [vmem:[#allocation7 + $0x18] sm:$0xff]  ;;  %v357_v63 = vld [vmem:[#allocation7 + $0x20] sm:$0xff]  ;;  %v358_v2 = vld [vmem:[#allocation7 + $0x28] sm:$0xff] }
  0x9e   :  { %3873 = vmatpush3.bf16.msra.mxu1 %v3872_v24  ;;  %v3893_v62 = vpack.c.bf16 %v356_v61, %v355_v59  ;;  %v3896_v3 = vpack.c.bf16 %v358_v2, %v357_v63  ;;  %v359_v4 = vld [vmem:[#allocation7 + $0x30] sm:$0xff]  ;;  %v360_v5 = vld [vmem:[#allocation7 + $0x38] sm:$0xff]  ;;  %v361_v7 = vld [vmem:[#allocation7 + $0x40] sm:$0xff] }
  0x9f   :  { %3874 = vmatprep.subr.bf16.mxu1 %v4671_v0  ;;  %v3899_v6 = vpack.c.bf16 %v360_v5, %v359_v4  ;;  %v362_v8 = vld [vmem:[#allocation7 + $0x48] sm:$0xff]  ;;  %v363_v10 = vld [vmem:[#allocation7 + $0x50] sm:$0xff]  ;;  %v364_v11 = vld [vmem:[#allocation7 + $0x58] sm:$0xff] }
  0xa0   :  { %3852 = vmatpush3.bf16.msra.mxu0 %v3851_v21  ;;  %v3902_v9 = vpack.c.bf16 %v362_v8, %v361_v7  ;;  %v3905_v12 = vpack.c.bf16 %v364_v11, %v363_v10  ;;  %v365_v13 = vld [vmem:[#allocation7 + $0x60] sm:$0xff]  ;;  %v366_v14 = vld [vmem:[#allocation7 + $0x68] sm:$0xff]  ;;  %v449_v24 = vld [vmem:[#allocation8 + $0x10] sm:$0xff] }
  0xa1   :  { %3853 = vmatprep.subr.bf16.mxu0 %v4671_v0  ;;  %v3908_v15 = vpack.c.bf16 %v366_v14, %v365_v13  ;;  %v2551_v16 = vld [vmem:[%s5273_s2] ss:$0 sm:$0xff]  ;;  %v448_v18 = vld [vmem:[#allocation8 + $0x8] sm:$0xff]  ;;  %v450_v25 = vld [vmem:[#allocation8 + $0x18] sm:$0xff] }
  0xa2   :  { %3876 = vmatpush3.bf16.msra.mxu1 %v3875_v31  ;;  %v447_v17 = vld [vmem:[#allocation8] sm:$0xff]  ;;  %v3917_v26 = vpack.c.bf16 %v450_v25, %v449_v24  ;;  %v453_v30 = vld [vmem:[#allocation8 + $0x30] sm:$0xff]  ;;  %v454_v31 = vld [vmem:[#allocation8 + $0x38] sm:$0xff] }
  0xa3   :  { %3877 = vmatprep.subr.bf16.mxu1 %v4671_v0  ;;  %v3914_v22 = vpack.c.bf16 %v448_v18, %v447_v17  ;;  %v451_v27 = vld [vmem:[#allocation8 + $0x20] sm:$0xff]  ;;  %v3923_v32 = vpack.c.bf16 %v454_v31, %v453_v30  ;;  %v456_v34 = vld [vmem:[#allocation8 + $0x48] sm:$0xff]  ;;  %v457_v36 = vld [vmem:[#allocation8 + $0x50] sm:$0xff] }
  0xa4   :  { %3855 = vmatpush3.bf16.msra.mxu0 %v3854_v28  ;;  %v452_v28 = vld [vmem:[#allocation8 + $0x28] sm:$0xff]  ;;  %v455_v33 = vld [vmem:[#allocation8 + $0x40] sm:$0xff]  ;;  %v458_v37 = vld [vmem:[#allocation8 + $0x58] sm:$0xff] }
  0xa5   :  { %3856 = vmatprep.subr.bf16.mxu0 %v4671_v0  ;;  %v3920_v29 = vpack.c.bf16 %v452_v28, %v451_v27  ;;  %v459_v40 = vld [vmem:[#allocation8 + $0x60] sm:$0xff]  ;;  %v460_v41 = vld [vmem:[#allocation8 + $0x68] sm:$0xff]  ;;  %v461_v44 = vld [vmem:[#allocation8 + $0x70] sm:$0xff] }
  0xa6   :  { %3879 = vmatpush3.bf16.msra.mxu1 %v3878_v38  ;;  %v3929_v38 = vpack.c.bf16 %v458_v37, %v457_v36  ;;  %v462_v45 = vld [vmem:[#allocation8 + $0x78] sm:$0xff]  ;;  %v367_v47 = vld [vmem:[#allocation7 + $0x70] sm:$0xff]  ;;  %v542_v54 = vld [vmem:[#allocation10 + $0x8] sm:$0xff] }
  0xa7   :  { %3880 = vmatprep.subr.bf16.mxu1 %v4671_v0  ;;  %v368_v48 = vld [vmem:[#allocation7 + $0x78] sm:$0xff]  ;;  %v545_v63 = vld [vmem:[#allocation10 + $0x20] sm:$0xff]  ;;  %v546_v2 = vld [vmem:[#allocation10 + $0x28] sm:$0xff] }
  0xa8   :  { %3858 = vmatpush3.bf16.msra.mxu0 %v3857_v35  ;;  %v3926_v35 = vpack.c.bf16 %v456_v34, %v455_v33  ;;  %v3911_v49 = vpack.c.bf16 %v368_v48, %v367_v47  ;;  %v544_v61 = vld [vmem:[#allocation10 + $0x18] sm:$0xff]  ;;  %v547_v4 = vld [vmem:[#allocation10 + $0x30] sm:$0xff]  ;;  %v549_v7 = vld [vmem:[#allocation10 + $0x40] sm:$0xff] }
  0xa9   :  { %3859 = vmatprep.subr.bf16.mxu0 %v4671_v0  ;;  %v548_v5 = vld [vmem:[#allocation10 + $0x38] sm:$0xff]  ;;  %v550_v8 = vld [vmem:[#allocation10 + $0x48] sm:$0xff]  ;;  %v551_v10 = vld [vmem:[#allocation10 + $0x50] sm:$0xff] }
  0xaa   :  { %3882 = vmatpush3.bf16.msra.mxu1 %v3881_v46  ;;  %v3935_v46 = vpack.c.bf16 %v462_v45, %v461_v44  ;;  %v552_v11 = vld [vmem:[#allocation10 + $0x58] sm:$0xff]  ;;  %v553_v13 = vld [vmem:[#allocation10 + $0x60] sm:$0xff]  ;;  %v554_v14 = vld [vmem:[#allocation10 + $0x68] sm:$0xff] }
  0xab   :  { %3883 = vmatprep.subr.bf16.mxu1 %v4671_v0  ;;  %v556_v17 = vld [vmem:[#allocation10 + $0x78] sm:$0xff]  ;;  %v2554_v18 = vld [vmem:[%s5279_s8] ss:$0 sm:$0xff]  ;;  %v636_v25 = vld [vmem:[#allocation11 + $0x8] sm:$0xff] }
  0xac   :  { %3861 = vmatpush3.bf16.msra.mxu0 %v3860_v42  ;;  %v3932_v42 = vpack.c.bf16 %v460_v41, %v459_v40  ;;  %v635_v24 = vld [vmem:[#allocation11] sm:$0xff]  ;;  %v637_v27 = vld [vmem:[#allocation11 + $0x10] sm:$0xff]  ;;  %v638_v28 = vld [vmem:[#allocation11 + $0x18] sm:$0xff] }
  0xad   :  { %3862 = vmatprep.subr.bf16.mxu0 %v4671_v0  ;;  %v639_v30 = vld [vmem:[#allocation11 + $0x20] sm:$0xff]  ;;  %v640_v31 = vld [vmem:[#allocation11 + $0x28] sm:$0xff]  ;;  %v641_v33 = vld [vmem:[#allocation11 + $0x30] sm:$0xff] }
  0xae   :  { %3885 = vmatpush3.bf16.msra.mxu1 %v3884_v52  ;;  %v541_v52 = vld [vmem:[#allocation10] sm:$0xff]  ;;  %v642_v34 = vld [vmem:[#allocation11 + $0x38] sm:$0xff]  ;;  %v644_v37 = vld [vmem:[#allocation11 + $0x48] sm:$0xff] }
  0xaf   :  { %3886 = vmatprep.subr.bf16.mxu1 %v4671_v0  ;;  %v3938_v58 = vpack.c.bf16 %v542_v54, %v541_v52  ;;  %v643_v36 = vld [vmem:[#allocation11 + $0x40] sm:$0xff]  ;;  %v645_v40 = vld [vmem:[#allocation11 + $0x50] sm:$0xff]  ;;  %v646_v41 = vld [vmem:[#allocation11 + $0x58] sm:$0xff] }
  0xb0   :  { %3864 = vmatpush3.bf16.msra.mxu0 %v3863_v50  ;;  %v2552_v50 = vld [vmem:[%s5275_s4] ss:$0 sm:$0xff]  ;;  %v648_v45 = vld [vmem:[#allocation11 + $0x68] sm:$0xff]  ;;  %v649_v47 = vld [vmem:[#allocation11 + $0x70] sm:$0xff] }
  0xb1   :  { %3889 = vmatprep.subr.bf16.mxu0 %v4671_v0  ;;  %v647_v44 = vld [vmem:[#allocation11 + $0x60] sm:$0xff]  ;;  %v650_v48 = vld [vmem:[#allocation11 + $0x78] sm:$0xff]  ;;  %v752_v52 = vld [vmem:[#allocation2 + $0x88] sm:$0xff] }
  0xb2   :  { %3888 = vmatpush3.bf16.msra.mxu1 %v3887_v56  ;;  %v753_v54 = vld [vmem:[#allocation2 + $0x90] sm:$0xff] }
  0xb3   :  { %3034 = vmatmul.mubr.f32.vlgmr.msra.gmra.mrb[0].mxu0 %v4915_v53  ;;  %3913 = vmatprep.subr.bf16.mxu1 %v4671_v0 }
  0xb4   :  { %3103 = vmatprep.mubr.msk.f32.mxu0 %vm4672_vm0, %v4673_v1  ;;  %3891 = vmatpush3.bf16.msra.mxu0 %v3890_v60  ;;  %v543_v60 = vld [vmem:[#allocation10 + $0x10] sm:$0xff] }
  0xb5   :  { %3892 = vmatprep.subr.bf16.mxu0 %v4671_v0 }
  0xb8   :  { %3894 = vmatpush3.bf16.msra.mxu0 %v3893_v62  ;;  %v3941_v62 = vpack.c.bf16 %v544_v61, %v543_v60  ;;  %v757_v61 = vld [vmem:[#allocation2 + $0xb0] sm:$0xff] }
  0xb9   :  { %3895 = vmatprep.subr.bf16.mxu0 %v4671_v0 }
  0xbc   :  { %3897 = vmatpush3.bf16.msra.mxu0 %v3896_v3  ;;  %v3944_v3 = vpack.c.bf16 %v546_v2, %v545_v63  ;;  %v759_v2 = vld [vmem:[#allocation2 + $0xc0] sm:$0xff] }
  0xbd   :  { %3898 = vmatprep.subr.bf16.mxu0 %v4671_v0 }
  0xc0   :  { %3900 = vmatpush3.bf16.msra.mxu0 %v3899_v6  ;;  %v3947_v6 = vpack.c.bf16 %v548_v5, %v547_v4 }
  0xc1   :  { %3901 = vmatprep.subr.bf16.mxu0 %v4671_v0 }
  0xc4   :  { %3903 = vmatpush3.bf16.msra.mxu0 %v3902_v9  ;;  %v3950_v9 = vpack.c.bf16 %v550_v8, %v549_v7  ;;  %v2555_v7 = vld [vmem:[%s5281_s10] ss:$0 sm:$0xff] }
  0xc5   :  { %3904 = vmatprep.subr.bf16.mxu0 %v4671_v0 }
  0xc8   :  { %3906 = vmatpush3.bf16.msra.mxu0 %v3905_v12  ;;  %v3953_v12 = vpack.c.bf16 %v552_v11, %v551_v10 }
  0xc9   :  { %3907 = vmatprep.subr.bf16.mxu0 %v4671_v0 }
  0xcc   :  { %3909 = vmatpush3.bf16.msra.mxu0 %v3908_v15  ;;  %v3956_v15 = vpack.c.bf16 %v554_v14, %v553_v13  ;;  %v762_v13 = vld [vmem:[#allocation2 + $0xd8] sm:$0xff] }
  0xcd   :  { %3910 = vmatprep.subr.bf16.mxu0 %v4671_v0 }
  0xd0   :  { %3912 = vmatpush3.bf16.msra.mxu0 %v3911_v49  ;;  %v3983_v49 = vpack.c.bf16 %v650_v48, %v649_v47  ;;  %v157_v48 = vsub.f32 1.0, %v4905_v43 }
  0xd1   :  { %3937 = vmatprep.subr.bf16.mxu0 %v4671_v0 }
 0x186   :  { %v254_v19 = vpop.f32.mrb[0].mxu0 }
 0x187   :  { %v255_v20 = vadd.f32 %v2551_v16, %v254_v19  ;;  %v3035_v21 = vpop.f32.mrb[1].mxu0  ;;  %v555_v16 = vld [vmem:[#allocation10 + $0x70] sm:$0xff] }
 0x188   :  { %v3959_v19 = vpack.c.bf16 %v556_v17, %v555_v16  ;;  %v764_v16 = vld [vmem:[#allocation2 + $0xe8] sm:$0xff] }
 0x189   :  { %v258_v23 = vmax.f32 %v255_v20, 0.0 }
 0x18b   :  { %3069 = vmatmul.mubr.f32.vlgmr.msra.gmra.mrb[0].mxu1 %v258_v23 }
 0x18c   :  { %3915 = vmatpush3.bf16.msra.mxu1 %v3914_v22  ;;  %3138 = vmatprep.mubr.msk.f32.mxu1 %vm4672_vm0, %v4673_v1 }
 0x18d   :  { %3916 = vmatprep.subr.bf16.mxu1 %v4671_v0 }
 0x190   :  { %3918 = vmatpush3.bf16.msra.mxu1 %v3917_v26  ;;  %v3962_v26 = vpack.c.bf16 %v636_v25, %v635_v24  ;;  %v850_v25 = vld [vmem:[#allocation5 + $0x98] sm:$0xff] }
 0x191   :  { %3919 = vmatprep.subr.bf16.mxu1 %v4671_v0 }
 0x194   :  { %3921 = vmatpush3.bf16.msra.mxu1 %v3920_v29  ;;  %v3965_v29 = vpack.c.bf16 %v638_v28, %v637_v27  ;;  %v851_v27 = vld [vmem:[#allocation5 + $0xa0] sm:$0xff]  ;;  %v852_v28 = vld [vmem:[#allocation5 + $0xa8] sm:$0xff] }
 0x195   :  { %3922 = vmatprep.subr.bf16.mxu1 %v4671_v0 }
 0x198   :  { %3924 = vmatpush3.bf16.msra.mxu1 %v3923_v32  ;;  %v3968_v32 = vpack.c.bf16 %v640_v31, %v639_v30  ;;  %v853_v30 = vld [vmem:[#allocation5 + $0xb0] sm:$0xff]  ;;  %v854_v31 = vld [vmem:[#allocation5 + $0xb8] sm:$0xff] }
 0x199   :  { %3925 = vmatprep.subr.bf16.mxu1 %v4671_v0 }
 0x19c   :  { %3927 = vmatpush3.bf16.msra.mxu1 %v3926_v35  ;;  %v3971_v35 = vpack.c.bf16 %v642_v34, %v641_v33  ;;  %v855_v33 = vld [vmem:[#allocation5 + $0xc0] sm:$0xff]  ;;  %v856_v34 = vld [vmem:[#allocation5 + $0xc8] sm:$0xff] }
 0x19d   :  { %3928 = vmatprep.subr.bf16.mxu1 %v4671_v0 }
 0x1a0   :  { %3930 = vmatpush3.bf16.msra.mxu1 %v3929_v38  ;;  %v3974_v38 = vpack.c.bf16 %v644_v37, %v643_v36  ;;  %v857_v36 = vld [vmem:[#allocation5 + $0xd0] sm:$0xff]  ;;  %v858_v37 = vld [vmem:[#allocation5 + $0xd8] sm:$0xff] }
 0x1a1   :  { %3931 = vmatprep.subr.bf16.mxu1 %v4671_v0 }
 0x1a4   :  { %3933 = vmatpush3.bf16.msra.mxu1 %v3932_v42  ;;  %v3977_v42 = vpack.c.bf16 %v646_v41, %v645_v40  ;;  %v859_v40 = vld [vmem:[#allocation5 + $0xe0] sm:$0xff]  ;;  %v860_v41 = vld [vmem:[#allocation5 + $0xe8] sm:$0xff] }
 0x1a5   :  { %3934 = vmatprep.subr.bf16.mxu1 %v4671_v0 }
 0x1a8   :  { %3936 = vmatpush3.bf16.msra.mxu1 %v3935_v46  ;;  %v3980_v46 = vpack.c.bf16 %v648_v45, %v647_v44  ;;  %v2553_v44 = vld [vmem:[%s5277_s6] ss:$0 sm:$0xff] }
 0x1a9   :  { %3961 = vmatprep.subr.bf16.mxu1 %v4671_v0 }
 0x1ab   :  { %3139 = vmatmul.mubr.f32.vlgmr.msra.gmra.mrb[2].mxu1 %v4915_v53 }
 0x1ac   :  { %3208 = vmatprep.mubr.msk.f32.mxu1 %vm4672_vm0, %v4673_v1  ;;  %3963 = vmatpush3.bf16.msra.mxu1 %v3962_v26 }
 0x1ad   :  { %3964 = vmatprep.subr.bf16.mxu1 %v4671_v0 }
 0x1b0   :  { %3966 = vmatpush3.bf16.msra.mxu1 %v3965_v29  ;;  %v4016_v29 = vpack.c.bf16 %v852_v28, %v851_v27 }
 0x1b1   :  { %3967 = vmatprep.subr.bf16.mxu1 %v4671_v0 }
 0x1b4   :  { %3969 = vmatpush3.bf16.msra.mxu1 %v3968_v32  ;;  %v4019_v32 = vpack.c.bf16 %v854_v31, %v853_v30  ;;  %v1041_v31 = vld [vmem:[#allocation8 + $0x90] sm:$0xff] }
 0x1b5   :  { %3970 = vmatprep.subr.bf16.mxu1 %v4671_v0 }
 0x1b8   :  { %3972 = vmatpush3.bf16.msra.mxu1 %v3971_v35  ;;  %v4022_v35 = vpack.c.bf16 %v856_v34, %v855_v33  ;;  %v1043_v34 = vld [vmem:[#allocation8 + $0xa0] sm:$0xff] }
 0x1b9   :  { %3973 = vmatprep.subr.bf16.mxu1 %v4671_v0 }
 0x1bc   :  { %3975 = vmatpush3.bf16.msra.mxu1 %v3974_v38  ;;  %v4025_v38 = vpack.c.bf16 %v858_v37, %v857_v36  ;;  %v1045_v37 = vld [vmem:[#allocation8 + $0xb0] sm:$0xff] }
 0x1bd   :  { %3976 = vmatprep.subr.bf16.mxu1 %v4671_v0 }
 0x1c0   :  { %3978 = vmatpush3.bf16.msra.mxu1 %v3977_v42  ;;  %v4028_v42 = vpack.c.bf16 %v860_v41, %v859_v40  ;;  %v1047_v41 = vld [vmem:[#allocation8 + $0xc0] sm:$0xff] }
 0x1c1   :  { %3979 = vmatprep.subr.bf16.mxu1 %v4671_v0 }
 0x1c4   :  { %3981 = vmatpush3.bf16.msra.mxu1 %v3980_v46 }
 0x1c5   :  { %3982 = vmatprep.subr.bf16.mxu1 %v4671_v0 }
 0x1c8   :  { %3984 = vmatpush3.bf16.msra.mxu1 %v3983_v49 }
 0x1c9   :  { %4009 = vmatprep.subr.bf16.mxu1 %v4671_v0 }
 0x25e   :  { %v348_v55 = vpop.f32.mrb[0].mxu1 }
 0x25f   :  { %v349_v56 = vadd.f32 %v2552_v50, %v348_v55  ;;  %v3070_v57 = vpop.f32.mrb[1].mxu1  ;;  %v751_v50 = vld [vmem:[#allocation2 + $0x80] sm:$0xff] }
 0x260   :  { %v3986_v55 = vpack.c.bf16 %v752_v52, %v751_v50  ;;  %v2556_v50 = vld [vmem:[#allocation13] ss:$0 sm:$0xff] }
 0x261   :  { %v352_v59 = vmax.f32 %v349_v56, 0.0  ;;  %v754_v56 = vld [vmem:[#allocation2 + $0x98] sm:$0xff] }
 0x262   :  { %v3989_v57 = vpack.c.bf16 %v754_v56, %v753_v54  ;;  %v736_v56 = vrot.slane %v157_v48, %v4899_v39  ;;  %v1051_v48 = vld [vmem:[#allocation8 + $0xe0] sm:$0xff] }
 0x263   :  { %3104 = vmatmul.mubr.f32.vlgmr.msra.gmra.mrb[2].mxu0 %v352_v59  ;;  %v756_v59 = vld [vmem:[#allocation2 + $0xa8] sm:$0xff] }
 0x264   :  { %3939 = vmatpush3.bf16.msra.mxu0 %v3938_v58  ;;  %3173 = vmatprep.mubr.msk.f32.mxu0 %vm4672_vm0, %v4673_v1  ;;  %v755_v58 = vld [vmem:[#allocation2 + $0xa0] sm:$0xff] }
 0x265   :  { %3940 = vmatprep.subr.bf16.mxu0 %v4671_v0  ;;  %v3992_v60 = vpack.c.bf16 %v756_v59, %v755_v58  ;;  %v5003_v58 = vld [vmem:[%s5271_s0 + $0x1] sm:$0x1] }
 0x268   :  { %3942 = vmatpush3.bf16.msra.mxu0 %v3941_v62  ;;  %v758_v62 = vld [vmem:[#allocation2 + $0xb8] sm:$0xff] }
 0x269   :  { %3943 = vmatprep.subr.bf16.mxu0 %v4671_v0  ;;  %v3995_v63 = vpack.c.bf16 %v758_v62, %v757_v61  ;;  %v747_v61 = vrot.slane %v5003_v58, %v4899_v39 }
 0x26c   :  { %3945 = vmatpush3.bf16.msra.mxu0 %v3944_v3  ;;  %v760_v3 = vld [vmem:[#allocation2 + $0xc8] sm:$0xff] }
 0x26d   :  { %3946 = vmatprep.subr.bf16.mxu0 %v4671_v0  ;;  %v3998_v4 = vpack.c.bf16 %v760_v3, %v759_v2  ;;  %v943_v3 = vld [vmem:[#allocation7 + $0x80] sm:$0xff] }
 0x270   :  { %3948 = vmatpush3.bf16.msra.mxu0 %v3947_v6 }
 0x271   :  { %3949 = vmatprep.subr.bf16.mxu0 %v4671_v0 }
 0x274   :  { %3951 = vmatpush3.bf16.msra.mxu0 %v3950_v9 }
 0x275   :  { %3952 = vmatprep.subr.bf16.mxu0 %v4671_v0 }
 0x278   :  { %3954 = vmatpush3.bf16.msra.mxu0 %v3953_v12  ;;  %v761_v12 = vld [vmem:[#allocation2 + $0xd0] sm:$0xff] }
 0x279   :  { %3955 = vmatprep.subr.bf16.mxu0 %v4671_v0  ;;  %v4001_v14 = vpack.c.bf16 %v762_v13, %v761_v12  ;;  %v950_v12 = vld [vmem:[#allocation7 + $0xb8] sm:$0xff] }
 0x27c   :  { %3957 = vmatpush3.bf16.msra.mxu0 %v3956_v15  ;;  %v763_v15 = vld [vmem:[#allocation2 + $0xe0] sm:$0xff] }
 0x27d   :  { %3958 = vmatprep.subr.bf16.mxu0 %v4671_v0  ;;  %v4004_v17 = vpack.c.bf16 %v764_v16, %v763_v15  ;;  %v952_v15 = vld [vmem:[#allocation7 + $0xc8] sm:$0xff] }
 0x27e   :  { %v536_v20 = vpop.f32.mrb[2].mxu1 }
 0x27f   :  { %v537_v21 = vadd.f32 %v2554_v18, %v536_v20  ;;  %v3140_v22 = vpop.f32.mrb[3].mxu1  ;;  %v765_v18 = vld [vmem:[#allocation2 + $0xf0] sm:$0xff] }
 0x280   :  { %3960 = vmatpush3.bf16.msra.mxu0 %v3959_v19  ;;  %v766_v19 = vld [vmem:[#allocation2 + $0xf8] sm:$0xff]  ;;  %v848_v22 = vld [vmem:[#allocation5 + $0x88] sm:$0xff] }
 0x281   :  { %v540_v23 = vmax.f32 %v537_v21, 0.0  ;;  %3985 = vmatprep.subr.bf16.mxu0 %v4671_v0  ;;  %v4007_v20 = vpack.c.bf16 %v766_v19, %v765_v18  ;;  %v847_v21 = vld [vmem:[#allocation5 + $0x80] sm:$0xff]  ;;  %v954_v18 = vld [vmem:[#allocation7 + $0xd8] sm:$0xff] }
 0x282   :  { %v4010_v24 = vpack.c.bf16 %v848_v22, %v847_v21  ;;  %v956_v21 = vld [vmem:[#allocation7 + $0xe8] sm:$0xff] }
 0x283   :  { %3174 = vmatmul.mubr.f32.vlgmr.msra.gmra.mrb[4].mxu0 %v540_v23  ;;  %v849_v23 = vld [vmem:[#allocation5 + $0x90] sm:$0xff] }
 0x284   :  { %3243 = vmatprep.mubr.msk.f32.mxu0 %vm4672_vm0, %v4673_v1  ;;  %3987 = vmatpush3.bf16.msra.mxu0 %v3986_v55  ;;  %v4013_v26 = vpack.c.bf16 %v850_v25, %v849_v23  ;;  %v2559_v23 = vld [vmem:[%s5273_s2 + $0x1] ss:$0 sm:$0xff]  ;;  %v1040_v25 = vld [vmem:[#allocation8 + $0x88] sm:$0xff] }
 0x285   :  { %3988 = vmatprep.subr.bf16.mxu0 %v4671_v0 }
 0x288   :  { %3990 = vmatpush3.bf16.msra.mxu0 %v3989_v57 }
 0x289   :  { %3991 = vmatprep.subr.bf16.mxu0 %v4671_v0 }
 0x28c   :  { %3993 = vmatpush3.bf16.msra.mxu0 %v3992_v60 }
 0x28d   :  { %3994 = vmatprep.subr.bf16.mxu0 %v4671_v0 }
 0x290   :  { %3996 = vmatpush3.bf16.msra.mxu0 %v3995_v63  ;;  %v862_v63 = vld [vmem:[#allocation5 + $0xf8] sm:$0xff] }
 0x291   :  { %3997 = vmatprep.subr.bf16.mxu0 %v4671_v0 }
 0x294   :  { %3999 = vmatpush3.bf16.msra.mxu0 %v3998_v4  ;;  %v944_v4 = vld [vmem:[#allocation7 + $0x88] sm:$0xff] }
 0x295   :  { %4000 = vmatprep.subr.bf16.mxu0 %v4671_v0 }
 0x298   :  { %4002 = vmatpush3.bf16.msra.mxu0 %v4001_v14  ;;  %v951_v14 = vld [vmem:[#allocation7 + $0xc0] sm:$0xff] }
 0x299   :  { %4003 = vmatprep.subr.bf16.mxu0 %v4671_v0  ;;  %v4046_v16 = vpack.c.bf16 %v952_v15, %v951_v14  ;;  %v1143_v14 = vld [vmem:[#allocation10 + $0xc0] sm:$0xff]  ;;  %v1144_v15 = vld [vmem:[#allocation10 + $0xc8] sm:$0xff] }
 0x29c   :  { %4005 = vmatpush3.bf16.msra.mxu0 %v4004_v17  ;;  %v953_v17 = vld [vmem:[#allocation7 + $0xd0] sm:$0xff] }
 0x29d   :  { %4006 = vmatprep.subr.bf16.mxu0 %v4671_v0  ;;  %v4049_v19 = vpack.c.bf16 %v954_v18, %v953_v17  ;;  %v1145_v17 = vld [vmem:[#allocation10 + $0xd0] sm:$0xff]  ;;  %v1146_v18 = vld [vmem:[#allocation10 + $0xd8] sm:$0xff] }
 0x2a0   :  { %4008 = vmatpush3.bf16.msra.mxu0 %v4007_v20  ;;  %v955_v20 = vld [vmem:[#allocation7 + $0xe0] sm:$0xff] }
 0x2a1   :  { %4033 = vmatprep.subr.bf16.mxu0 %v4671_v0  ;;  %v4052_v22 = vpack.c.bf16 %v956_v21, %v955_v20  ;;  %v1147_v20 = vld [vmem:[#allocation10 + $0xe0] sm:$0xff]  ;;  %v1148_v21 = vld [vmem:[#allocation10 + $0xe8] sm:$0xff] }
 0x336   :  { %v442_v5 = vpop.f32.mrb[2].mxu0 }
 0x337   :  { %v3105_v6 = vpop.f32.mrb[3].mxu0  ;;  %v443_v45 = vadd.f32 %v2553_v44, %v442_v5  ;;  %v945_v5 = vld [vmem:[#allocation7 + $0x90] sm:$0xff] }
 0x338   :  { %v4034_v6 = vpack.c.bf16 %v944_v4, %v943_v3 }
 0x339   :  { %4433 = vtanh.f32 %v443_v45  ;;  %v1049_v45 = vld [vmem:[#allocation8 + $0xd0] sm:$0xff] }
 0x343   :  { %v4434_v46 = vpop.eup %4433 }
 0x344   :  { %v728_v47 = vmul.f32 1.442695, %v4434_v46  ;;  %v1050_v46 = vld [vmem:[#allocation8 + $0xd8] sm:$0xff] }
 0x346   :  { %4435 = vpow2.f32 %v728_v47  ;;  %v4073_v47 = vpack.c.bf16 %v1050_v46, %v1049_v45  ;;  %v1239_v45 = vld [vmem:[#allocation11 + $0xc0] sm:$0xff]  ;;  %v1240_v46 = vld [vmem:[#allocation11 + $0xc8] sm:$0xff] }
 0x350   :  { %v4436_v49 = vpop.eup %4435 }
 0x351   :  { %v730_v55 = vmul.f32 %v4436_v49, %v4911_v51  ;;  %v861_v51 = vld [vmem:[#allocation5 + $0xf0] sm:$0xff]  ;;  %v1052_v49 = vld [vmem:[#allocation8 + $0xe8] sm:$0xff] }
 0x352   :  { %v4031_v2 = vpack.c.bf16 %v862_v63, %v861_v51  ;;  %v1136_v51 = vld [vmem:[#allocation10 + $0x88] sm:$0xff] }
 0x356   :  { %v630_v8 = vpop.f32.mrb[4].mxu0 }
 0x357   :  { %v631_v9 = vadd.f32 %v2555_v7, %v630_v8  ;;  %v3175_v10 = vpop.f32.mrb[5].mxu0  ;;  %v947_v8 = vld [vmem:[#allocation7 + $0xa0] sm:$0xff] }
 0x359   :  { %v634_v11 = vmax.f32 %v631_v9, 0.0  ;;  %v948_v9 = vld [vmem:[#allocation7 + $0xa8] sm:$0xff] }
 0x35a   :  { %v4040_v10 = vpack.c.bf16 %v948_v9, %v947_v8  ;;  %v1139_v8 = vld [vmem:[#allocation10 + $0xa0] sm:$0xff]  ;;  %v1140_v9 = vld [vmem:[#allocation10 + $0xa8] sm:$0xff] }
 0x35b   :  { %3209 = vmatmul.mubr.f32.vlgmr.msra.gmra.mrb[4].mxu1 %v634_v11  ;;  %v949_v11 = vld [vmem:[#allocation7 + $0xb0] sm:$0xff] }
 0x35c   :  { %3278 = vmatprep.mubr.msk.f32.mxu1 %vm4672_vm0, %v4673_v1  ;;  %4011 = vmatpush3.bf16.msra.mxu1 %v4010_v24  ;;  %v4043_v13 = vpack.c.bf16 %v950_v12, %v949_v11  ;;  %v1039_v24 = vld [vmem:[#allocation8 + $0x80] sm:$0xff]  ;;  %v1141_v11 = vld [vmem:[#allocation10 + $0xb0] sm:$0xff]  ;;  %v1142_v12 = vld [vmem:[#allocation10 + $0xb8] sm:$0xff] }
 0x35d   :  { %4012 = vmatprep.subr.bf16.mxu1 %v4671_v0 }
 0x360   :  { %4014 = vmatpush3.bf16.msra.mxu1 %v4013_v26 }
 0x361   :  { %4015 = vmatprep.subr.bf16.mxu1 %v4671_v0 }
 0x364   :  { %4017 = vmatpush3.bf16.msra.mxu1 %v4016_v29  ;;  %v4058_v29 = vpack.c.bf16 %v1040_v25, %v1039_v24  ;;  %v1150_v24 = vld [vmem:[#allocation10 + $0xf8] sm:$0xff]  ;;  %v2565_v25 = vld [vmem:[%s5279_s8 + $0x1] ss:$0 sm:$0xff] }
 0x365   :  { %4018 = vmatprep.subr.bf16.mxu1 %v4671_v0 }
 0x368   :  { %4020 = vmatpush3.bf16.msra.mxu1 %v4019_v32  ;;  %v1042_v32 = vld [vmem:[#allocation8 + $0x98] sm:$0xff] }
 0x369   :  { %4021 = vmatprep.subr.bf16.mxu1 %v4671_v0  ;;  %v4061_v33 = vpack.c.bf16 %v1042_v32, %v1041_v31  ;;  %v1231_v31 = vld [vmem:[#allocation11 + $0x80] sm:$0xff]  ;;  %v1232_v32 = vld [vmem:[#allocation11 + $0x88] sm:$0xff] }
 0x36c   :  { %4023 = vmatpush3.bf16.msra.mxu1 %v4022_v35  ;;  %v1044_v35 = vld [vmem:[#allocation8 + $0xa8] sm:$0xff] }
 0x36d   :  { %4024 = vmatprep.subr.bf16.mxu1 %v4671_v0  ;;  %v4064_v36 = vpack.c.bf16 %v1044_v35, %v1043_v34  ;;  %v1233_v34 = vld [vmem:[#allocation11 + $0x90] sm:$0xff]  ;;  %v1234_v35 = vld [vmem:[#allocation11 + $0x98] sm:$0xff] }
 0x370   :  { %4026 = vmatpush3.bf16.msra.mxu1 %v4025_v38  ;;  %v1046_v38 = vld [vmem:[#allocation8 + $0xb8] sm:$0xff] }
 0x371   :  { %4027 = vmatprep.subr.bf16.mxu1 %v4671_v0  ;;  %v4067_v40 = vpack.c.bf16 %v1046_v38, %v1045_v37  ;;  %v1235_v37 = vld [vmem:[#allocation11 + $0xa0] sm:$0xff]  ;;  %v1236_v38 = vld [vmem:[#allocation11 + $0xa8] sm:$0xff] }
 0x374   :  { %4029 = vmatpush3.bf16.msra.mxu1 %v4028_v42  ;;  %v1048_v42 = vld [vmem:[#allocation8 + $0xc8] sm:$0xff] }
 0x375   :  { %4030 = vmatprep.subr.bf16.mxu1 %v4671_v0  ;;  %v4070_v44 = vpack.c.bf16 %v1048_v42, %v1047_v41  ;;  %v1237_v41 = vld [vmem:[#allocation11 + $0xb0] sm:$0xff]  ;;  %v1238_v42 = vld [vmem:[#allocation11 + $0xb8] sm:$0xff] }
 0x378   :  { %4032 = vmatpush3.bf16.msra.mxu1 %v4031_v2 }
 0x379   :  { %4057 = vmatprep.subr.bf16.mxu1 %v4671_v0 }
 0x42e   :  { %v724_v52 = vpop.f32.mrb[4].mxu1 }
 0x42f   :  { %v725_v54 = vadd.f32 %v2556_v50, %v724_v52  ;;  %v3210_v57 = vpop.f32.mrb[5].mxu1  ;;  %v4076_v50 = vpack.c.bf16 %v1052_v49, %v1051_v48  ;;  %v1053_v52 = vld [vmem:[#allocation8 + $0xf0] sm:$0xff]  ;;  %v1242_v49 = vld [vmem:[#allocation11 + $0xd8] sm:$0xff] }
 0x430   :  { %v958_v57 = vld [vmem:[#allocation7 + $0xf8] sm:$0xff]  ;;  %v1241_v48 = vld [vmem:[#allocation11 + $0xd0] sm:$0xff] }
 0x431   :  { %v731_v59 = vadd.f32 %v730_v55, %v725_v54  ;;  %v1054_v54 = vld [vmem:[#allocation8 + $0xf8] sm:$0xff] }
 0x432   :  { %v4079_v55 = vpack.c.bf16 %v1054_v54, %v1053_v52  ;;  %v1243_v52 = vld [vmem:[#allocation11 + $0xe0] sm:$0xff]  ;;  %v1244_v54 = vld [vmem:[#allocation11 + $0xe8] sm:$0xff] }
 0x433   :  { %v738_v60 = vmul.f32 %v736_v56, %v731_v59  ;;  %v957_v56 = vld [vmem:[#allocation7 + $0xf0] sm:$0xff] }
 0x434   :  { %v4055_v59 = vpack.c.bf16 %v958_v57, %v957_v56  ;;  %v1245_v56 = vld [vmem:[#allocation11 + $0xf0] sm:$0xff]  ;;  %v1246_v57 = vld [vmem:[#allocation11 + $0xf8] sm:$0xff] }
 0x435   :  { %v5008_v43 = vadd.f32 %v738_v60, %v4915_v53  ;;  %v946_v53 = vld [vmem:[#allocation7 + $0x98] sm:$0xff]  ;;  %v2561_v60 = vld [vmem:[%s5275_s4 + $0x1] ss:$0 sm:$0xff] }
 0x436   :  { %v4037_v7 = vpack.c.bf16 %v946_v53, %v945_v5  ;;  %v1138_v53 = vld [vmem:[#allocation10 + $0x98] sm:$0xff] }
 0x437   :  { %v5011_v62 = vmul.f32 %v747_v61, %v5008_v43  ;;  %v1135_v61 = vld [vmem:[#allocation10 + $0x80] sm:$0xff] }
 0x438   :  { %v4082_v4 = vpack.c.bf16 %v1136_v51, %v1135_v61  ;;  %v1349_v61 = vld [vmem:[#allocation2 + $0x108] sm:$0xff]  ;;  %v1350_v51 = vld [vmem:[#allocation2 + $0x110] sm:$0xff] }
 0x439   :  { %3244 = vmatmul.mubr.f32.vlgmr.msra.gmra.mrb[6].mxu0 %v5011_v62 }
 0x43a   :  { %3313 = vmatprep.mubr.msk.f32.mxu0 %vm4672_vm0, %v4673_v1  ;;  %4035 = vmatpush3.bf16.msra.mxu0 %v4034_v6  ;;  %v1137_v6 = vld [vmem:[#allocation10 + $0x90] sm:$0xff] }
 0x43b   :  { %4036 = vmatprep.subr.bf16.mxu0 %v4671_v0 }
 0x43e   :  { %4038 = vmatpush3.bf16.msra.mxu0 %v4037_v7  ;;  %v4085_v7 = vpack.c.bf16 %v1138_v53, %v1137_v6  ;;  %v1354_v53 = vld [vmem:[#allocation2 + $0x130] sm:$0xff] }
 0x43f   :  { %4039 = vmatprep.subr.bf16.mxu0 %v4671_v0 }
 0x442   :  { %4041 = vmatpush3.bf16.msra.mxu0 %v4040_v10  ;;  %v4088_v10 = vpack.c.bf16 %v1140_v9, %v1139_v8  ;;  %v1356_v9 = vld [vmem:[#allocation2 + $0x140] sm:$0xff] }
 0x443   :  { %4042 = vmatprep.subr.bf16.mxu0 %v4671_v0 }
 0x446   :  { %4044 = vmatpush3.bf16.msra.mxu0 %v4043_v13  ;;  %v4091_v13 = vpack.c.bf16 %v1142_v12, %v1141_v11 }
 0x447   :  { %4045 = vmatprep.subr.bf16.mxu0 %v4671_v0 }
 0x44a   :  { %4047 = vmatpush3.bf16.msra.mxu0 %v4046_v16  ;;  %v4094_v16 = vpack.c.bf16 %v1144_v15, %v1143_v14  ;;  %v2567_v14 = vld [vmem:[%s5281_s10 + $0x1] ss:$0 sm:$0xff] }
 0x44b   :  { %4048 = vmatprep.subr.bf16.mxu0 %v4671_v0 }
 0x44e   :  { %4050 = vmatpush3.bf16.msra.mxu0 %v4049_v19  ;;  %v4097_v19 = vpack.c.bf16 %v1146_v18, %v1145_v17 }
 0x44f   :  { %4051 = vmatprep.subr.bf16.mxu0 %v4671_v0 }
 0x452   :  { %4053 = vmatpush3.bf16.msra.mxu0 %v4052_v22  ;;  %v4100_v22 = vpack.c.bf16 %v1148_v21, %v1147_v20  ;;  %v1359_v20 = vld [vmem:[#allocation2 + $0x158] sm:$0xff] }
 0x453   :  { %4054 = vmatprep.subr.bf16.mxu0 %v4671_v0 }
 0x456   :  { %4056 = vmatpush3.bf16.msra.mxu0 %v4055_v59  ;;  %v4127_v59 = vpack.c.bf16 %v1246_v57, %v1245_v56  ;;  %v742_v57 = vsub.f32 1.0, %v5003_v58 }
 0x457   :  { %4081 = vmatprep.subr.bf16.mxu0 %v4671_v0 }
 0x50c   :  { %v841_v26 = vpop.f32.mrb[6].mxu0 }
 0x50d   :  { %v842_v27 = vadd.f32 %v2559_v23, %v841_v26  ;;  %v3245_v28 = vpop.f32.mrb[7].mxu0  ;;  %v1149_v23 = vld [vmem:[#allocation10 + $0xf0] sm:$0xff] }
 0x50e   :  { %v4103_v26 = vpack.c.bf16 %v1150_v24, %v1149_v23  ;;  %v1361_v23 = vld [vmem:[#allocation2 + $0x168] sm:$0xff] }
 0x50f   :  { %v845_v30 = vmax.f32 %v842_v27, 0.0 }
 0x511   :  { %3279 = vmatmul.mubr.f32.vlgmr.msra.gmra.mrb[6].mxu1 %v845_v30 }
 0x512   :  { %4059 = vmatpush3.bf16.msra.mxu1 %v4058_v29  ;;  %3348 = vmatprep.mubr.msk.f32.mxu1 %vm4672_vm0, %v4673_v1 }
 0x513   :  { %4060 = vmatprep.subr.bf16.mxu1 %v4671_v0 }
 0x516   :  { %4062 = vmatpush3.bf16.msra.mxu1 %v4061_v33  ;;  %v4106_v33 = vpack.c.bf16 %v1232_v32, %v1231_v31  ;;  %v1447_v32 = vld [vmem:[#allocation5 + $0x118] sm:$0xff] }
 0x517   :  { %4063 = vmatprep.subr.bf16.mxu1 %v4671_v0 }
 0x51a   :  { %4065 = vmatpush3.bf16.msra.mxu1 %v4064_v36  ;;  %v4109_v36 = vpack.c.bf16 %v1234_v35, %v1233_v34  ;;  %v1448_v34 = vld [vmem:[#allocation5 + $0x120] sm:$0xff]  ;;  %v1449_v35 = vld [vmem:[#allocation5 + $0x128] sm:$0xff] }
 0x51b   :  { %4066 = vmatprep.subr.bf16.mxu1 %v4671_v0 }
 0x51e   :  { %4068 = vmatpush3.bf16.msra.mxu1 %v4067_v40  ;;  %v4112_v40 = vpack.c.bf16 %v1236_v38, %v1235_v37  ;;  %v1450_v37 = vld [vmem:[#allocation5 + $0x130] sm:$0xff]  ;;  %v1451_v38 = vld [vmem:[#allocation5 + $0x138] sm:$0xff] }
 0x51f   :  { %4069 = vmatprep.subr.bf16.mxu1 %v4671_v0 }
 0x522   :  { %4071 = vmatpush3.bf16.msra.mxu1 %v4070_v44  ;;  %v4115_v44 = vpack.c.bf16 %v1238_v42, %v1237_v41  ;;  %v1452_v41 = vld [vmem:[#allocation5 + $0x140] sm:$0xff]  ;;  %v1453_v42 = vld [vmem:[#allocation5 + $0x148] sm:$0xff] }
 0x523   :  { %4072 = vmatprep.subr.bf16.mxu1 %v4671_v0 }
 0x526   :  { %4074 = vmatpush3.bf16.msra.mxu1 %v4073_v47  ;;  %v4118_v47 = vpack.c.bf16 %v1240_v46, %v1239_v45  ;;  %v1454_v45 = vld [vmem:[#allocation5 + $0x150] sm:$0xff]  ;;  %v1455_v46 = vld [vmem:[#allocation5 + $0x158] sm:$0xff] }
 0x527   :  { %4075 = vmatprep.subr.bf16.mxu1 %v4671_v0 }
 0x52a   :  { %4077 = vmatpush3.bf16.msra.mxu1 %v4076_v50  ;;  %v4121_v50 = vpack.c.bf16 %v1242_v49, %v1241_v48  ;;  %v1456_v48 = vld [vmem:[#allocation5 + $0x160] sm:$0xff]  ;;  %v1457_v49 = vld [vmem:[#allocation5 + $0x168] sm:$0xff] }
 0x52b   :  { %4078 = vmatprep.subr.bf16.mxu1 %v4671_v0 }
 0x52e   :  { %4080 = vmatpush3.bf16.msra.mxu1 %v4079_v55  ;;  %v4124_v55 = vpack.c.bf16 %v1244_v54, %v1243_v52  ;;  %v2563_v52 = vld [vmem:[%s5277_s6 + $0x1] ss:$0 sm:$0xff] }
 0x52f   :  { %4105 = vmatprep.subr.bf16.mxu1 %v4671_v0 }
 0x531   :  { %3349 = vmatmul.mubr.f32.vlgmr.msra.gmra.mrb[8].mxu1 %v5011_v62 }
 0x532   :  { %3418 = vmatprep.mubr.msk.f32.mxu1 %vm4672_vm0, %v4673_v1  ;;  %4107 = vmatpush3.bf16.msra.mxu1 %v4106_v33 }
 0x533   :  { %4108 = vmatprep.subr.bf16.mxu1 %v4671_v0 }
 0x536   :  { %4110 = vmatpush3.bf16.msra.mxu1 %v4109_v36  ;;  %v4160_v36 = vpack.c.bf16 %v1449_v35, %v1448_v34 }
 0x537   :  { %4111 = vmatprep.subr.bf16.mxu1 %v4671_v0 }
 0x53a   :  { %4113 = vmatpush3.bf16.msra.mxu1 %v4112_v40  ;;  %v4163_v40 = vpack.c.bf16 %v1451_v38, %v1450_v37  ;;  %v1638_v38 = vld [vmem:[#allocation8 + $0x110] sm:$0xff] }
 0x53b   :  { %4114 = vmatprep.subr.bf16.mxu1 %v4671_v0 }
 0x53e   :  { %4116 = vmatpush3.bf16.msra.mxu1 %v4115_v44  ;;  %v4166_v44 = vpack.c.bf16 %v1453_v42, %v1452_v41  ;;  %v1640_v42 = vld [vmem:[#allocation8 + $0x120] sm:$0xff] }
 0x53f   :  { %4117 = vmatprep.subr.bf16.mxu1 %v4671_v0 }
 0x542   :  { %4119 = vmatpush3.bf16.msra.mxu1 %v4118_v47  ;;  %v4169_v47 = vpack.c.bf16 %v1455_v46, %v1454_v45  ;;  %v1642_v46 = vld [vmem:[#allocation8 + $0x130] sm:$0xff] }
 0x543   :  { %4120 = vmatprep.subr.bf16.mxu1 %v4671_v0 }
 0x546   :  { %4122 = vmatpush3.bf16.msra.mxu1 %v4121_v50  ;;  %v4172_v50 = vpack.c.bf16 %v1457_v49, %v1456_v48  ;;  %v1644_v49 = vld [vmem:[#allocation8 + $0x140] sm:$0xff] }
 0x547   :  { %4123 = vmatprep.subr.bf16.mxu1 %v4671_v0 }
 0x54a   :  { %4125 = vmatpush3.bf16.msra.mxu1 %v4124_v55 }
 0x54b   :  { %4126 = vmatprep.subr.bf16.mxu1 %v4671_v0 }
 0x54e   :  { %4128 = vmatpush3.bf16.msra.mxu1 %v4127_v59 }
 0x54f   :  { %4153 = vmatprep.subr.bf16.mxu1 %v4671_v0 }
 0x5e4   :  { %v937_v63 = vpop.f32.mrb[6].mxu1 }
 0x5e5   :  { %v938_v2 = vadd.f32 %v2561_v60, %v937_v63  ;;  %v3280_v3 = vpop.f32.mrb[7].mxu1  ;;  %v1348_v60 = vld [vmem:[#allocation2 + $0x100] sm:$0xff] }
 0x5e6   :  { %v4130_v63 = vpack.c.bf16 %v1349_v61, %v1348_v60  ;;  %v2568_v60 = vld [vmem:[#allocation13 + $0x1] ss:$0 sm:$0xff] }
 0x5e7   :  { %v941_v5 = vmax.f32 %v938_v2, 0.0  ;;  %v1351_v2 = vld [vmem:[#allocation2 + $0x118] sm:$0xff] }
 0x5e8   :  { %v4133_v3 = vpack.c.bf16 %v1351_v2, %v1350_v51  ;;  %v1333_v2 = vrot.slane %v742_v57, %v4899_v39  ;;  %v1648_v57 = vld [vmem:[#allocation8 + $0x160] sm:$0xff] }
 0x5e9   :  { %3314 = vmatmul.mubr.f32.vlgmr.msra.gmra.mrb[8].mxu0 %v941_v5  ;;  %v1353_v5 = vld [vmem:[#allocation2 + $0x128] sm:$0xff] }
 0x5ea   :  { %4083 = vmatpush3.bf16.msra.mxu0 %v4082_v4  ;;  %3383 = vmatprep.mubr.msk.f32.mxu0 %vm4672_vm0, %v4673_v1  ;;  %v1352_v4 = vld [vmem:[#allocation2 + $0x120] sm:$0xff] }
 0x5eb   :  { %4084 = vmatprep.subr.bf16.mxu0 %v4671_v0  ;;  %v4136_v6 = vpack.c.bf16 %v1353_v5, %v1352_v4  ;;  %v5096_v4 = vld [vmem:[%s5271_s0 + $0x2] sm:$0x1] }
 0x5ee   :  { %4086 = vmatpush3.bf16.msra.mxu0 %v4085_v7  ;;  %v1355_v7 = vld [vmem:[#allocation2 + $0x138] sm:$0xff] }
 0x5ef   :  { %4087 = vmatprep.subr.bf16.mxu0 %v4671_v0  ;;  %v4139_v8 = vpack.c.bf16 %v1355_v7, %v1354_v53  ;;  %v1344_v53 = vrot.slane %v5096_v4, %v4899_v39 }
 0x5f2   :  { %4089 = vmatpush3.bf16.msra.mxu0 %v4088_v10  ;;  %v1357_v10 = vld [vmem:[#allocation2 + $0x148] sm:$0xff] }
 0x5f3   :  { %4090 = vmatprep.subr.bf16.mxu0 %v4671_v0  ;;  %v4142_v11 = vpack.c.bf16 %v1357_v10, %v1356_v9  ;;  %v1540_v10 = vld [vmem:[#allocation7 + $0x100] sm:$0xff] }
 0x5f6   :  { %4092 = vmatpush3.bf16.msra.mxu0 %v4091_v13 }
 0x5f7   :  { %4093 = vmatprep.subr.bf16.mxu0 %v4671_v0 }
 0x5fa   :  { %4095 = vmatpush3.bf16.msra.mxu0 %v4094_v16 }
 0x5fb   :  { %4096 = vmatprep.subr.bf16.mxu0 %v4671_v0 }
 0x5fe   :  { %4098 = vmatpush3.bf16.msra.mxu0 %v4097_v19  ;;  %v1358_v19 = vld [vmem:[#allocation2 + $0x150] sm:$0xff] }
 0x5ff   :  { %4099 = vmatprep.subr.bf16.mxu0 %v4671_v0  ;;  %v4145_v21 = vpack.c.bf16 %v1359_v20, %v1358_v19  ;;  %v1547_v19 = vld [vmem:[#allocation7 + $0x138] sm:$0xff] }
 0x602   :  { %4101 = vmatpush3.bf16.msra.mxu0 %v4100_v22  ;;  %v1360_v22 = vld [vmem:[#allocation2 + $0x160] sm:$0xff] }
 0x603   :  { %4102 = vmatprep.subr.bf16.mxu0 %v4671_v0  ;;  %v4148_v24 = vpack.c.bf16 %v1361_v23, %v1360_v22  ;;  %v1549_v22 = vld [vmem:[#allocation7 + $0x148] sm:$0xff] }
 0x604   :  { %v1129_v27 = vpop.f32.mrb[8].mxu1 }
 0x605   :  { %v1130_v28 = vadd.f32 %v2565_v25, %v1129_v27  ;;  %v3350_v29 = vpop.f32.mrb[9].mxu1  ;;  %v1362_v25 = vld [vmem:[#allocation2 + $0x170] sm:$0xff] }
 0x606   :  { %4104 = vmatpush3.bf16.msra.mxu0 %v4103_v26  ;;  %v1363_v26 = vld [vmem:[#allocation2 + $0x178] sm:$0xff]  ;;  %v1445_v29 = vld [vmem:[#allocation5 + $0x108] sm:$0xff] }
 0x607   :  { %v1133_v30 = vmax.f32 %v1130_v28, 0.0  ;;  %4129 = vmatprep.subr.bf16.mxu0 %v4671_v0  ;;  %v4151_v27 = vpack.c.bf16 %v1363_v26, %v1362_v25  ;;  %v1444_v28 = vld [vmem:[#allocation5 + $0x100] sm:$0xff]  ;;  %v1551_v25 = vld [vmem:[#allocation7 + $0x158] sm:$0xff] }
 0x608   :  { %v4154_v31 = vpack.c.bf16 %v1445_v29, %v1444_v28  ;;  %v1553_v28 = vld [vmem:[#allocation7 + $0x168] sm:$0xff] }
 0x609   :  { %3384 = vmatmul.mubr.f32.vlgmr.msra.gmra.mrb[10].mxu0 %v1133_v30  ;;  %v1446_v30 = vld [vmem:[#allocation5 + $0x110] sm:$0xff] }
 0x60a   :  { %3453 = vmatprep.mubr.msk.f32.mxu0 %vm4672_vm0, %v4673_v1  ;;  %4131 = vmatpush3.bf16.msra.mxu0 %v4130_v63  ;;  %v4157_v33 = vpack.c.bf16 %v1447_v32, %v1446_v30  ;;  %v2571_v30 = vld [vmem:[%s5273_s2 + $0x2] ss:$0 sm:$0xff]  ;;  %v1637_v32 = vld [vmem:[#allocation8 + $0x108] sm:$0xff] }
 0x60b   :  { %4132 = vmatprep.subr.bf16.mxu0 %v4671_v0 }
 0x60e   :  { %4134 = vmatpush3.bf16.msra.mxu0 %v4133_v3 }
 0x60f   :  { %4135 = vmatprep.subr.bf16.mxu0 %v4671_v0 }
 0x612   :  { %4137 = vmatpush3.bf16.msra.mxu0 %v4136_v6 }
 0x613   :  { %4138 = vmatprep.subr.bf16.mxu0 %v4671_v0 }
 0x616   :  { %4140 = vmatpush3.bf16.msra.mxu0 %v4139_v8  ;;  %v1459_v8 = vld [vmem:[#allocation5 + $0x178] sm:$0xff] }
 0x617   :  { %4141 = vmatprep.subr.bf16.mxu0 %v4671_v0 }
 0x61a   :  { %4143 = vmatpush3.bf16.msra.mxu0 %v4142_v11  ;;  %v1541_v11 = vld [vmem:[#allocation7 + $0x108] sm:$0xff] }
 0x61b   :  { %4144 = vmatprep.subr.bf16.mxu0 %v4671_v0 }
 0x61e   :  { %4146 = vmatpush3.bf16.msra.mxu0 %v4145_v21  ;;  %v1548_v21 = vld [vmem:[#allocation7 + $0x140] sm:$0xff] }
 0x61f   :  { %4147 = vmatprep.subr.bf16.mxu0 %v4671_v0  ;;  %v4190_v23 = vpack.c.bf16 %v1549_v22, %v1548_v21  ;;  %v1740_v21 = vld [vmem:[#allocation10 + $0x140] sm:$0xff]  ;;  %v1741_v22 = vld [vmem:[#allocation10 + $0x148] sm:$0xff] }
 0x622   :  { %4149 = vmatpush3.bf16.msra.mxu0 %v4148_v24  ;;  %v1550_v24 = vld [vmem:[#allocation7 + $0x150] sm:$0xff] }
 0x623   :  { %4150 = vmatprep.subr.bf16.mxu0 %v4671_v0  ;;  %v4193_v26 = vpack.c.bf16 %v1551_v25, %v1550_v24  ;;  %v1742_v24 = vld [vmem:[#allocation10 + $0x150] sm:$0xff]  ;;  %v1743_v25 = vld [vmem:[#allocation10 + $0x158] sm:$0xff] }
 0x626   :  { %4152 = vmatpush3.bf16.msra.mxu0 %v4151_v27  ;;  %v1552_v27 = vld [vmem:[#allocation7 + $0x160] sm:$0xff] }
 0x627   :  { %4177 = vmatprep.subr.bf16.mxu0 %v4671_v0  ;;  %v4196_v29 = vpack.c.bf16 %v1553_v28, %v1552_v27  ;;  %v1744_v27 = vld [vmem:[#allocation10 + $0x160] sm:$0xff]  ;;  %v1745_v28 = vld [vmem:[#allocation10 + $0x168] sm:$0xff] }
 0x6bc   :  { %v1033_v12 = vpop.f32.mrb[8].mxu0 }
 0x6bd   :  { %v3315_v13 = vpop.f32.mrb[9].mxu0  ;;  %v1034_v54 = vadd.f32 %v2563_v52, %v1033_v12  ;;  %v1542_v12 = vld [vmem:[#allocation7 + $0x110] sm:$0xff] }
 0x6be   :  { %v4178_v13 = vpack.c.bf16 %v1541_v11, %v1540_v10 }
 0x6bf   :  { %4437 = vtanh.f32 %v1034_v54  ;;  %v1646_v54 = vld [vmem:[#allocation8 + $0x150] sm:$0xff] }
 0x6c9   :  { %v4438_v55 = vpop.eup %4437 }
 0x6ca   :  { %v1325_v56 = vmul.f32 1.442695, %v4438_v55  ;;  %v1647_v55 = vld [vmem:[#allocation8 + $0x158] sm:$0xff] }
 0x6cc   :  { %4439 = vpow2.f32 %v1325_v56  ;;  %v4217_v56 = vpack.c.bf16 %v1647_v55, %v1646_v54  ;;  %v1836_v54 = vld [vmem:[#allocation11 + $0x140] sm:$0xff]  ;;  %v1837_v55 = vld [vmem:[#allocation11 + $0x148] sm:$0xff] }
 0x6d6   :  { %v4440_v59 = vpop.eup %4439 }
 0x6d7   :  { %v1327_v63 = vmul.f32 %v4440_v59, %v5008_v43  ;;  %v1458_v43 = vld [vmem:[#allocation5 + $0x170] sm:$0xff]  ;;  %v1649_v59 = vld [vmem:[#allocation8 + $0x168] sm:$0xff] }
 0x6d8   :  { %v4175_v9 = vpack.c.bf16 %v1459_v8, %v1458_v43  ;;  %v1733_v43 = vld [vmem:[#allocation10 + $0x108] sm:$0xff] }
 0x6dc   :  { %v1225_v15 = vpop.f32.mrb[10].mxu0 }
 0x6dd   :  { %v1226_v16 = vadd.f32 %v2567_v14, %v1225_v15  ;;  %v3385_v17 = vpop.f32.mrb[11].mxu0  ;;  %v1544_v15 = vld [vmem:[#allocation7 + $0x120] sm:$0xff] }
 0x6df   :  { %v1229_v18 = vmax.f32 %v1226_v16, 0.0  ;;  %v1545_v16 = vld [vmem:[#allocation7 + $0x128] sm:$0xff] }
 0x6e0   :  { %v4184_v17 = vpack.c.bf16 %v1545_v16, %v1544_v15  ;;  %v1736_v15 = vld [vmem:[#allocation10 + $0x120] sm:$0xff]  ;;  %v1737_v16 = vld [vmem:[#allocation10 + $0x128] sm:$0xff] }
 0x6e1   :  { %3419 = vmatmul.mubr.f32.vlgmr.msra.gmra.mrb[10].mxu1 %v1229_v18  ;;  %v1546_v18 = vld [vmem:[#allocation7 + $0x130] sm:$0xff] }
 0x6e2   :  { %3488 = vmatprep.mubr.msk.f32.mxu1 %vm4672_vm0, %v4673_v1  ;;  %4155 = vmatpush3.bf16.msra.mxu1 %v4154_v31  ;;  %v4187_v20 = vpack.c.bf16 %v1547_v19, %v1546_v18  ;;  %v1636_v31 = vld [vmem:[#allocation8 + $0x100] sm:$0xff]  ;;  %v1738_v18 = vld [vmem:[#allocation10 + $0x130] sm:$0xff]  ;;  %v1739_v19 = vld [vmem:[#allocation10 + $0x138] sm:$0xff] }
 0x6e3   :  { %4156 = vmatprep.subr.bf16.mxu1 %v4671_v0 }
 0x6e6   :  { %4158 = vmatpush3.bf16.msra.mxu1 %v4157_v33 }
 0x6e7   :  { %4159 = vmatprep.subr.bf16.mxu1 %v4671_v0 }
 0x6ea   :  { %4161 = vmatpush3.bf16.msra.mxu1 %v4160_v36  ;;  %v4202_v36 = vpack.c.bf16 %v1637_v32, %v1636_v31  ;;  %v1747_v31 = vld [vmem:[#allocation10 + $0x178] sm:$0xff]  ;;  %v2577_v32 = vld [vmem:[%s5279_s8 + $0x2] ss:$0 sm:$0xff] }
 0x6eb   :  { %4162 = vmatprep.subr.bf16.mxu1 %v4671_v0 }
 0x6ee   :  { %4164 = vmatpush3.bf16.msra.mxu1 %v4163_v40  ;;  %v1639_v40 = vld [vmem:[#allocation8 + $0x118] sm:$0xff] }
 0x6ef   :  { %4165 = vmatprep.subr.bf16.mxu1 %v4671_v0  ;;  %v4205_v41 = vpack.c.bf16 %v1639_v40, %v1638_v38  ;;  %v1828_v38 = vld [vmem:[#allocation11 + $0x100] sm:$0xff]  ;;  %v1829_v40 = vld [vmem:[#allocation11 + $0x108] sm:$0xff] }
 0x6f2   :  { %4167 = vmatpush3.bf16.msra.mxu1 %v4166_v44  ;;  %v1641_v44 = vld [vmem:[#allocation8 + $0x128] sm:$0xff] }
 0x6f3   :  { %4168 = vmatprep.subr.bf16.mxu1 %v4671_v0  ;;  %v4208_v45 = vpack.c.bf16 %v1641_v44, %v1640_v42  ;;  %v1830_v42 = vld [vmem:[#allocation11 + $0x110] sm:$0xff]  ;;  %v1831_v44 = vld [vmem:[#allocation11 + $0x118] sm:$0xff] }
 0x6f6   :  { %4170 = vmatpush3.bf16.msra.mxu1 %v4169_v47  ;;  %v1643_v47 = vld [vmem:[#allocation8 + $0x138] sm:$0xff] }
 0x6f7   :  { %4171 = vmatprep.subr.bf16.mxu1 %v4671_v0  ;;  %v4211_v48 = vpack.c.bf16 %v1643_v47, %v1642_v46  ;;  %v1832_v46 = vld [vmem:[#allocation11 + $0x120] sm:$0xff]  ;;  %v1833_v47 = vld [vmem:[#allocation11 + $0x128] sm:$0xff] }
 0x6fa   :  { %4173 = vmatpush3.bf16.msra.mxu1 %v4172_v50  ;;  %v1645_v50 = vld [vmem:[#allocation8 + $0x148] sm:$0xff] }
 0x6fb   :  { %4174 = vmatprep.subr.bf16.mxu1 %v4671_v0  ;;  %v4214_v52 = vpack.c.bf16 %v1645_v50, %v1644_v49  ;;  %v1834_v49 = vld [vmem:[#allocation11 + $0x130] sm:$0xff]  ;;  %v1835_v50 = vld [vmem:[#allocation11 + $0x138] sm:$0xff] }
 0x6fe   :  { %4176 = vmatpush3.bf16.msra.mxu1 %v4175_v9 }
 0x6ff   :  { %4201 = vmatprep.subr.bf16.mxu1 %v4671_v0 }
 0x7b4   :  { %v1321_v61 = vpop.f32.mrb[10].mxu1 }
 0x7b5   :  { %v1322_v51 = vadd.f32 %v2568_v60, %v1321_v61  ;;  %v3420_v3 = vpop.f32.mrb[11].mxu1  ;;  %v4220_v60 = vpack.c.bf16 %v1649_v59, %v1648_v57  ;;  %v1650_v61 = vld [vmem:[#allocation8 + $0x170] sm:$0xff]  ;;  %v1839_v59 = vld [vmem:[#allocation11 + $0x158] sm:$0xff] }
 0x7b6   :  { %v1555_v3 = vld [vmem:[#allocation7 + $0x178] sm:$0xff]  ;;  %v1838_v57 = vld [vmem:[#allocation11 + $0x150] sm:$0xff] }
 0x7b7   :  { %v1328_v5 = vadd.f32 %v1327_v63, %v1322_v51  ;;  %v1651_v51 = vld [vmem:[#allocation8 + $0x178] sm:$0xff] }
 0x7b8   :  { %v4223_v63 = vpack.c.bf16 %v1651_v51, %v1650_v61  ;;  %v1840_v61 = vld [vmem:[#allocation11 + $0x160] sm:$0xff]  ;;  %v1841_v51 = vld [vmem:[#allocation11 + $0x168] sm:$0xff] }
 0x7b9   :  { %v1335_v6 = vmul.f32 %v1333_v2, %v1328_v5  ;;  %v1554_v2 = vld [vmem:[#allocation7 + $0x170] sm:$0xff] }
 0x7ba   :  { %v4199_v5 = vpack.c.bf16 %v1555_v3, %v1554_v2  ;;  %v1842_v2 = vld [vmem:[#allocation11 + $0x170] sm:$0xff]  ;;  %v1843_v3 = vld [vmem:[#allocation11 + $0x178] sm:$0xff] }
 0x7bb   :  { %v5101_v58 = vadd.f32 %v1335_v6, %v5011_v62  ;;  %v1543_v62 = vld [vmem:[#allocation7 + $0x118] sm:$0xff]  ;;  %v2573_v6 = vld [vmem:[%s5275_s4 + $0x2] ss:$0 sm:$0xff] }
 0x7bc   :  { %v4181_v14 = vpack.c.bf16 %v1543_v62, %v1542_v12  ;;  %v1735_v62 = vld [vmem:[#allocation10 + $0x118] sm:$0xff] }
 0x7bd   :  { %v5104_v7 = vmul.f32 %v1344_v53, %v5101_v58  ;;  %v1732_v53 = vld [vmem:[#allocation10 + $0x100] sm:$0xff] }
 0x7be   :  { %v4226_v11 = vpack.c.bf16 %v1733_v43, %v1732_v53  ;;  %v1946_v53 = vld [vmem:[#allocation2 + $0x188] sm:$0xff]  ;;  %v1947_v43 = vld [vmem:[#allocation2 + $0x190] sm:$0xff] }
 0x7bf   :  { %3454 = vmatmul.mubr.f32.vlgmr.msra.gmra.mrb[12].mxu0 %v5104_v7 }
 0x7c0   :  { %3523 = vmatprep.mubr.msk.f32.mxu0 %vm4672_vm0, %v4673_v1  ;;  %4179 = vmatpush3.bf16.msra.mxu0 %v4178_v13  ;;  %v1734_v13 = vld [vmem:[#allocation10 + $0x110] sm:$0xff] }
 0x7c1   :  { %4180 = vmatprep.subr.bf16.mxu0 %v4671_v0 }
 0x7c4   :  { %4182 = vmatpush3.bf16.msra.mxu0 %v4181_v14  ;;  %v4229_v14 = vpack.c.bf16 %v1735_v62, %v1734_v13  ;;  %v1951_v62 = vld [vmem:[#allocation2 + $0x1b0] sm:$0xff] }
 0x7c5   :  { %4183 = vmatprep.subr.bf16.mxu0 %v4671_v0 }
 0x7c8   :  { %4185 = vmatpush3.bf16.msra.mxu0 %v4184_v17  ;;  %v4232_v17 = vpack.c.bf16 %v1737_v16, %v1736_v15  ;;  %v1953_v16 = vld [vmem:[#allocation2 + $0x1c0] sm:$0xff] }
 0x7c9   :  { %4186 = vmatprep.subr.bf16.mxu0 %v4671_v0 }
 0x7cc   :  { %4188 = vmatpush3.bf16.msra.mxu0 %v4187_v20  ;;  %v4235_v20 = vpack.c.bf16 %v1739_v19, %v1738_v18 }
 0x7cd   :  { %4189 = vmatprep.subr.bf16.mxu0 %v4671_v0 }
 0x7d0   :  { %4191 = vmatpush3.bf16.msra.mxu0 %v4190_v23  ;;  %v4238_v23 = vpack.c.bf16 %v1741_v22, %v1740_v21  ;;  %v2579_v21 = vld [vmem:[%s5281_s10 + $0x2] ss:$0 sm:$0xff] }
 0x7d1   :  { %4192 = vmatprep.subr.bf16.mxu0 %v4671_v0 }
 0x7d4   :  { %4194 = vmatpush3.bf16.msra.mxu0 %v4193_v26  ;;  %v4241_v26 = vpack.c.bf16 %v1743_v25, %v1742_v24 }
 0x7d5   :  { %4195 = vmatprep.subr.bf16.mxu0 %v4671_v0 }
 0x7d8   :  { %4197 = vmatpush3.bf16.msra.mxu0 %v4196_v29  ;;  %v4244_v29 = vpack.c.bf16 %v1745_v28, %v1744_v27  ;;  %v1956_v27 = vld [vmem:[#allocation2 + $0x1d8] sm:$0xff] }
 0x7d9   :  { %4198 = vmatprep.subr.bf16.mxu0 %v4671_v0 }
 0x7dc   :  { %4200 = vmatpush3.bf16.msra.mxu0 %v4199_v5  ;;  %v4271_v5 = vpack.c.bf16 %v1843_v3, %v1842_v2  ;;  %v1339_v3 = vsub.f32 1.0, %v5096_v4 }
 0x7dd   :  { %4225 = vmatprep.subr.bf16.mxu0 %v4671_v0 }
 0x892   :  { %v1438_v33 = vpop.f32.mrb[12].mxu0 }
 0x893   :  { %v1439_v34 = vadd.f32 %v2571_v30, %v1438_v33  ;;  %v3455_v35 = vpop.f32.mrb[13].mxu0  ;;  %v1746_v30 = vld [vmem:[#allocation10 + $0x170] sm:$0xff] }
 0x894   :  { %v4247_v33 = vpack.c.bf16 %v1747_v31, %v1746_v30  ;;  %v1958_v30 = vld [vmem:[#allocation2 + $0x1e8] sm:$0xff] }
 0x895   :  { %v1442_v37 = vmax.f32 %v1439_v34, 0.0 }
 0x897   :  { %3489 = vmatmul.mubr.f32.vlgmr.msra.gmra.mrb[12].mxu1 %v1442_v37 }
 0x898   :  { %4203 = vmatpush3.bf16.msra.mxu1 %v4202_v36  ;;  %3558 = vmatprep.mubr.msk.f32.mxu1 %vm4672_vm0, %v4673_v1 }
 0x899   :  { %4204 = vmatprep.subr.bf16.mxu1 %v4671_v0 }
 0x89c   :  { %4206 = vmatpush3.bf16.msra.mxu1 %v4205_v41  ;;  %v4250_v41 = vpack.c.bf16 %v1829_v40, %v1828_v38  ;;  %v2044_v40 = vld [vmem:[#allocation5 + $0x198] sm:$0xff] }
 0x89d   :  { %4207 = vmatprep.subr.bf16.mxu1 %v4671_v0 }
 0x8a0   :  { %4209 = vmatpush3.bf16.msra.mxu1 %v4208_v45  ;;  %v4253_v45 = vpack.c.bf16 %v1831_v44, %v1830_v42  ;;  %v2045_v42 = vld [vmem:[#allocation5 + $0x1a0] sm:$0xff]  ;;  %v2046_v44 = vld [vmem:[#allocation5 + $0x1a8] sm:$0xff] }
 0x8a1   :  { %4210 = vmatprep.subr.bf16.mxu1 %v4671_v0 }
 0x8a4   :  { %4212 = vmatpush3.bf16.msra.mxu1 %v4211_v48  ;;  %v4256_v48 = vpack.c.bf16 %v1833_v47, %v1832_v46  ;;  %v2047_v46 = vld [vmem:[#allocation5 + $0x1b0] sm:$0xff]  ;;  %v2048_v47 = vld [vmem:[#allocation5 + $0x1b8] sm:$0xff] }
 0x8a5   :  { %4213 = vmatprep.subr.bf16.mxu1 %v4671_v0 }
 0x8a8   :  { %4215 = vmatpush3.bf16.msra.mxu1 %v4214_v52  ;;  %v4259_v52 = vpack.c.bf16 %v1835_v50, %v1834_v49  ;;  %v2049_v49 = vld [vmem:[#allocation5 + $0x1c0] sm:$0xff]  ;;  %v2050_v50 = vld [vmem:[#allocation5 + $0x1c8] sm:$0xff] }
 0x8a9   :  { %4216 = vmatprep.subr.bf16.mxu1 %v4671_v0 }
 0x8ac   :  { %4218 = vmatpush3.bf16.msra.mxu1 %v4217_v56  ;;  %v4262_v56 = vpack.c.bf16 %v1837_v55, %v1836_v54  ;;  %v2051_v54 = vld [vmem:[#allocation5 + $0x1d0] sm:$0xff]  ;;  %v2052_v55 = vld [vmem:[#allocation5 + $0x1d8] sm:$0xff] }
 0x8ad   :  { %4219 = vmatprep.subr.bf16.mxu1 %v4671_v0 }
 0x8b0   :  { %4221 = vmatpush3.bf16.msra.mxu1 %v4220_v60  ;;  %v4265_v60 = vpack.c.bf16 %v1839_v59, %v1838_v57  ;;  %v2053_v57 = vld [vmem:[#allocation5 + $0x1e0] sm:$0xff]  ;;  %v2054_v59 = vld [vmem:[#allocation5 + $0x1e8] sm:$0xff] }
 0x8b1   :  { %4222 = vmatprep.subr.bf16.mxu1 %v4671_v0 }
 0x8b4   :  { %4224 = vmatpush3.bf16.msra.mxu1 %v4223_v63  ;;  %v4268_v63 = vpack.c.bf16 %v1841_v51, %v1840_v61  ;;  %v2575_v61 = vld [vmem:[%s5277_s6 + $0x2] ss:$0 sm:$0xff] }
 0x8b5   :  { %4249 = vmatprep.subr.bf16.mxu1 %v4671_v0 }
 0x8b7   :  { %3559 = vmatmul.mubr.f32.vlgmr.msra.gmra.mrb[14].mxu1 %v5104_v7 }
 0x8b8   :  { %3628 = vmatprep.mubr.msk.f32.mxu1 %vm4672_vm0, %v4673_v1  ;;  %4251 = vmatpush3.bf16.msra.mxu1 %v4250_v41 }
 0x8b9   :  { %4252 = vmatprep.subr.bf16.mxu1 %v4671_v0 }
 0x8bc   :  { %4254 = vmatpush3.bf16.msra.mxu1 %v4253_v45  ;;  %v4304_v45 = vpack.c.bf16 %v2046_v44, %v2045_v42 }
 0x8bd   :  { %4255 = vmatprep.subr.bf16.mxu1 %v4671_v0 }
 0x8c0   :  { %4257 = vmatpush3.bf16.msra.mxu1 %v4256_v48  ;;  %v4307_v48 = vpack.c.bf16 %v2048_v47, %v2047_v46  ;;  %v2235_v47 = vld [vmem:[#allocation8 + $0x190] sm:$0xff] }
 0x8c1   :  { %4258 = vmatprep.subr.bf16.mxu1 %v4671_v0 }
 0x8c4   :  { %4260 = vmatpush3.bf16.msra.mxu1 %v4259_v52  ;;  %v4310_v52 = vpack.c.bf16 %v2050_v50, %v2049_v49  ;;  %v2237_v50 = vld [vmem:[#allocation8 + $0x1a0] sm:$0xff] }
 0x8c5   :  { %4261 = vmatprep.subr.bf16.mxu1 %v4671_v0 }
 0x8c8   :  { %4263 = vmatpush3.bf16.msra.mxu1 %v4262_v56  ;;  %v4313_v56 = vpack.c.bf16 %v2052_v55, %v2051_v54  ;;  %v2239_v55 = vld [vmem:[#allocation8 + $0x1b0] sm:$0xff] }
 0x8c9   :  { %4264 = vmatprep.subr.bf16.mxu1 %v4671_v0 }
 0x8cc   :  { %4266 = vmatpush3.bf16.msra.mxu1 %v4265_v60  ;;  %v4316_v60 = vpack.c.bf16 %v2054_v59, %v2053_v57  ;;  %v2241_v59 = vld [vmem:[#allocation8 + $0x1c0] sm:$0xff] }
 0x8cd   :  { %4267 = vmatprep.subr.bf16.mxu1 %v4671_v0 }
 0x8d0   :  { %4269 = vmatpush3.bf16.msra.mxu1 %v4268_v63 }
 0x8d1   :  { %4270 = vmatprep.subr.bf16.mxu1 %v4671_v0 }
 0x8d4   :  { %4272 = vmatpush3.bf16.msra.mxu1 %v4271_v5 }
 0x8d5   :  { %4297 = vmatprep.subr.bf16.mxu1 %v4671_v0 }
 0x96a   :  { %v1534_v8 = vpop.f32.mrb[12].mxu1 }
 0x96b   :  { %v1535_v9 = vadd.f32 %v2573_v6, %v1534_v8  ;;  %v3490_v10 = vpop.f32.mrb[13].mxu1  ;;  %v1945_v6 = vld [vmem:[#allocation2 + $0x180] sm:$0xff] }
 0x96c   :  { %v4274_v8 = vpack.c.bf16 %v1946_v53, %v1945_v6  ;;  %v2580_v6 = vld [vmem:[#allocation13 + $0x2] ss:$0 sm:$0xff] }
 0x96d   :  { %v1538_v12 = vmax.f32 %v1535_v9, 0.0  ;;  %v1948_v9 = vld [vmem:[#allocation2 + $0x198] sm:$0xff] }
 0x96e   :  { %v4277_v10 = vpack.c.bf16 %v1948_v9, %v1947_v43  ;;  %v1930_v9 = vrot.slane %v1339_v3, %v4899_v39  ;;  %v2245_v3 = vld [vmem:[#allocation8 + $0x1e0] sm:$0xff] }
 0x96f   :  { %3524 = vmatmul.mubr.f32.vlgmr.msra.gmra.mrb[14].mxu0 %v1538_v12  ;;  %v1950_v12 = vld [vmem:[#allocation2 + $0x1a8] sm:$0xff] }
 0x970   :  { %4227 = vmatpush3.bf16.msra.mxu0 %v4226_v11  ;;  %3593 = vmatprep.mubr.msk.f32.mxu0 %vm4672_vm0, %v4673_v1  ;;  %v1949_v11 = vld [vmem:[#allocation2 + $0x1a0] sm:$0xff] }
 0x971   :  { %4228 = vmatprep.subr.bf16.mxu0 %v4671_v0  ;;  %v4280_v13 = vpack.c.bf16 %v1950_v12, %v1949_v11  ;;  %v5189_v11 = vld [vmem:[%s5271_s0 + $0x3] sm:$0x1] }
 0x974   :  { %4230 = vmatpush3.bf16.msra.mxu0 %v4229_v14  ;;  %v1952_v14 = vld [vmem:[#allocation2 + $0x1b8] sm:$0xff] }
 0x975   :  { %4231 = vmatprep.subr.bf16.mxu0 %v4671_v0  ;;  %v4283_v15 = vpack.c.bf16 %v1952_v14, %v1951_v62  ;;  %v1941_v62 = vrot.slane %v5189_v11, %v4899_v39 }
 0x978   :  { %4233 = vmatpush3.bf16.msra.mxu0 %v4232_v17  ;;  %v1954_v17 = vld [vmem:[#allocation2 + $0x1c8] sm:$0xff] }
 0x979   :  { %4234 = vmatprep.subr.bf16.mxu0 %v4671_v0  ;;  %v4286_v18 = vpack.c.bf16 %v1954_v17, %v1953_v16  ;;  %v2137_v17 = vld [vmem:[#allocation7 + $0x180] sm:$0xff] }
 0x97c   :  { %4236 = vmatpush3.bf16.msra.mxu0 %v4235_v20 }
 0x97d   :  { %4237 = vmatprep.subr.bf16.mxu0 %v4671_v0 }
 0x980   :  { %4239 = vmatpush3.bf16.msra.mxu0 %v4238_v23 }
 0x981   :  { %4240 = vmatprep.subr.bf16.mxu0 %v4671_v0 }
 0x984   :  { %4242 = vmatpush3.bf16.msra.mxu0 %v4241_v26  ;;  %v1955_v26 = vld [vmem:[#allocation2 + $0x1d0] sm:$0xff] }
 0x985   :  { %4243 = vmatprep.subr.bf16.mxu0 %v4671_v0  ;;  %v4289_v28 = vpack.c.bf16 %v1956_v27, %v1955_v26  ;;  %v2144_v26 = vld [vmem:[#allocation7 + $0x1b8] sm:$0xff] }
 0x988   :  { %4245 = vmatpush3.bf16.msra.mxu0 %v4244_v29  ;;  %v1957_v29 = vld [vmem:[#allocation2 + $0x1e0] sm:$0xff] }
 0x989   :  { %4246 = vmatprep.subr.bf16.mxu0 %v4671_v0  ;;  %v4292_v31 = vpack.c.bf16 %v1958_v30, %v1957_v29  ;;  %v2146_v29 = vld [vmem:[#allocation7 + $0x1c8] sm:$0xff] }
 0x98a   :  { %v1726_v34 = vpop.f32.mrb[14].mxu1 }
 0x98b   :  { %v1727_v35 = vadd.f32 %v2577_v32, %v1726_v34  ;;  %v3560_v36 = vpop.f32.mrb[15].mxu1  ;;  %v1959_v32 = vld [vmem:[#allocation2 + $0x1f0] sm:$0xff] }
 0x98c   :  { %4248 = vmatpush3.bf16.msra.mxu0 %v4247_v33  ;;  %v1960_v33 = vld [vmem:[#allocation2 + $0x1f8] sm:$0xff]  ;;  %v2042_v36 = vld [vmem:[#allocation5 + $0x188] sm:$0xff] }
 0x98d   :  { %v1730_v37 = vmax.f32 %v1727_v35, 0.0  ;;  %4273 = vmatprep.subr.bf16.mxu0 %v4671_v0  ;;  %v4295_v34 = vpack.c.bf16 %v1960_v33, %v1959_v32  ;;  %v2041_v35 = vld [vmem:[#allocation5 + $0x180] sm:$0xff]  ;;  %v2148_v32 = vld [vmem:[#allocation7 + $0x1d8] sm:$0xff] }
 0x98e   :  { %v4298_v38 = vpack.c.bf16 %v2042_v36, %v2041_v35  ;;  %v2150_v35 = vld [vmem:[#allocation7 + $0x1e8] sm:$0xff] }
 0x98f   :  { %3594 = vmatmul.mubr.f32.vlgmr.msra.gmra.mrb[16].mxu0 %v1730_v37  ;;  %v2043_v37 = vld [vmem:[#allocation5 + $0x190] sm:$0xff] }
 0x990   :  { %3663 = vmatprep.mubr.msk.f32.mxu0 %vm4672_vm0, %v4673_v1  ;;  %4275 = vmatpush3.bf16.msra.mxu0 %v4274_v8  ;;  %v4301_v41 = vpack.c.bf16 %v2044_v40, %v2043_v37  ;;  %v2583_v37 = vld [vmem:[%s5273_s2 + $0x3] ss:$0 sm:$0xff]  ;;  %v2234_v40 = vld [vmem:[#allocation8 + $0x188] sm:$0xff] }
 0x991   :  { %4276 = vmatprep.subr.bf16.mxu0 %v4671_v0 }
 0x994   :  { %4278 = vmatpush3.bf16.msra.mxu0 %v4277_v10 }
 0x995   :  { %4279 = vmatprep.subr.bf16.mxu0 %v4671_v0 }
 0x998   :  { %4281 = vmatpush3.bf16.msra.mxu0 %v4280_v13 }
 0x999   :  { %4282 = vmatprep.subr.bf16.mxu0 %v4671_v0 }
 0x99c   :  { %4284 = vmatpush3.bf16.msra.mxu0 %v4283_v15  ;;  %v2056_v15 = vld [vmem:[#allocation5 + $0x1f8] sm:$0xff] }
 0x99d   :  { %4285 = vmatprep.subr.bf16.mxu0 %v4671_v0 }
 0x9a0   :  { %4287 = vmatpush3.bf16.msra.mxu0 %v4286_v18  ;;  %v2138_v18 = vld [vmem:[#allocation7 + $0x188] sm:$0xff] }
 0x9a1   :  { %4288 = vmatprep.subr.bf16.mxu0 %v4671_v0 }
 0x9a4   :  { %4290 = vmatpush3.bf16.msra.mxu0 %v4289_v28  ;;  %v2145_v28 = vld [vmem:[#allocation7 + $0x1c0] sm:$0xff] }
 0x9a5   :  { %4291 = vmatprep.subr.bf16.mxu0 %v4671_v0  ;;  %v4334_v30 = vpack.c.bf16 %v2146_v29, %v2145_v28  ;;  %v2337_v28 = vld [vmem:[#allocation10 + $0x1c0] sm:$0xff]  ;;  %v2338_v29 = vld [vmem:[#allocation10 + $0x1c8] sm:$0xff] }
 0x9a8   :  { %4293 = vmatpush3.bf16.msra.mxu0 %v4292_v31  ;;  %v2147_v31 = vld [vmem:[#allocation7 + $0x1d0] sm:$0xff] }
 0x9a9   :  { %4294 = vmatprep.subr.bf16.mxu0 %v4671_v0  ;;  %v4337_v33 = vpack.c.bf16 %v2148_v32, %v2147_v31  ;;  %v2340_v31 = vld [vmem:[#allocation10 + $0x1d8] sm:$0xff] }
 0x9ac   :  { %4296 = vmatpush3.bf16.msra.mxu0 %v4295_v34  ;;  %v2149_v34 = vld [vmem:[#allocation7 + $0x1e0] sm:$0xff] }
 0x9ad   :  { %4321 = vmatprep.subr.bf16.mxu0 %v4671_v0  ;;  %v4340_v36 = vpack.c.bf16 %v2150_v35, %v2149_v34  ;;  %v2342_v34 = vld [vmem:[#allocation10 + $0x1e8] sm:$0xff] }
 0xa42   :  { %v1630_v19 = vpop.f32.mrb[14].mxu0 }
 0xa43   :  { %v3525_v20 = vpop.f32.mrb[15].mxu0  ;;  %v1631_v51 = vadd.f32 %v2575_v61, %v1630_v19  ;;  %v2139_v19 = vld [vmem:[#allocation7 + $0x190] sm:$0xff] }
 0xa44   :  { %v4322_v20 = vpack.c.bf16 %v2138_v18, %v2137_v17 }
 0xa45   :  { %4441 = vtanh.f32 %v1631_v51  ;;  %v2243_v51 = vld [vmem:[#allocation8 + $0x1d0] sm:$0xff] }
 0xa4f   :  { %v4442_v63 = vpop.eup %4441 }
 0xa50   :  { %v1922_v2 = vmul.f32 1.442695, %v4442_v63  ;;  %v2244_v63 = vld [vmem:[#allocation8 + $0x1d8] sm:$0xff] }
 0xa52   :  { %4443 = vpow2.f32 %v1922_v2  ;;  %v4361_v2 = vpack.c.bf16 %v2244_v63, %v2243_v51  ;;  %v2434_v51 = vld [vmem:[#allocation11 + $0x1c8] sm:$0xff] }
 0xa5c   :  { %v4444_v5 = vpop.eup %4443 }
 0xa5d   :  { %v1924_v8 = vmul.f32 %v4444_v5, %v5101_v58  ;;  %v2055_v58 = vld [vmem:[#allocation5 + $0x1f0] sm:$0xff]  ;;  %v2246_v5 = vld [vmem:[#allocation8 + $0x1e8] sm:$0xff] }
 0xa5e   :  { %v4319_v16 = vpack.c.bf16 %v2056_v15, %v2055_v58  ;;  %v2330_v58 = vld [vmem:[#allocation10 + $0x188] sm:$0xff] }
 0xa62   :  { %v1822_v22 = vpop.f32.mrb[16].mxu0 }
 0xa63   :  { %v1823_v23 = vadd.f32 %v2579_v21, %v1822_v22  ;;  %v3595_v24 = vpop.f32.mrb[17].mxu0  ;;  %v2141_v22 = vld [vmem:[#allocation7 + $0x1a0] sm:$0xff] }
 0xa65   :  { %v1826_v25 = vmax.f32 %v1823_v23, 0.0  ;;  %v2142_v23 = vld [vmem:[#allocation7 + $0x1a8] sm:$0xff] }
 0xa66   :  { %v4328_v24 = vpack.c.bf16 %v2142_v23, %v2141_v22  ;;  %v2333_v22 = vld [vmem:[#allocation10 + $0x1a0] sm:$0xff]  ;;  %v2334_v23 = vld [vmem:[#allocation10 + $0x1a8] sm:$0xff] }
 0xa67   :  { %3629 = vmatmul.mubr.f32.vlgmr.msra.gmra.mrb[16].mxu1 %v1826_v25  ;;  %v2143_v25 = vld [vmem:[#allocation7 + $0x1b0] sm:$0xff] }
 0xa68   :  { %3698 = vmatprep.mubr.msk.f32.mxu1 %vm4672_vm0, %v4673_v1  ;;  %4299 = vmatpush3.bf16.msra.mxu1 %v4298_v38  ;;  %v4331_v27 = vpack.c.bf16 %v2144_v26, %v2143_v25  ;;  %v2233_v38 = vld [vmem:[#allocation8 + $0x180] sm:$0xff]  ;;  %v2335_v25 = vld [vmem:[#allocation10 + $0x1b0] sm:$0xff]  ;;  %v2336_v26 = vld [vmem:[#allocation10 + $0x1b8] sm:$0xff] }
 0xa69   :  { %4300 = vmatprep.subr.bf16.mxu1 %v4671_v0 }
 0xa6c   :  { %4302 = vmatpush3.bf16.msra.mxu1 %v4301_v41 }
 0xa6d   :  { %4303 = vmatprep.subr.bf16.mxu1 %v4671_v0 }
 0xa70   :  { %4305 = vmatpush3.bf16.msra.mxu1 %v4304_v45  ;;  %v4346_v45 = vpack.c.bf16 %v2234_v40, %v2233_v38  ;;  %v2589_v38 = vld [vmem:[%s5279_s8 + $0x3] ss:$0 sm:$0xff] }
 0xa71   :  { %4306 = vmatprep.subr.bf16.mxu1 %v4671_v0 }
 0xa74   :  { %4308 = vmatpush3.bf16.msra.mxu1 %v4307_v48  ;;  %v2236_v48 = vld [vmem:[#allocation8 + $0x198] sm:$0xff] }
 0xa75   :  { %4309 = vmatprep.subr.bf16.mxu1 %v4671_v0  ;;  %v4349_v49 = vpack.c.bf16 %v2236_v48, %v2235_v47  ;;  %v2426_v47 = vld [vmem:[#allocation11 + $0x188] sm:$0xff] }
 0xa78   :  { %4311 = vmatpush3.bf16.msra.mxu1 %v4310_v52  ;;  %v2238_v52 = vld [vmem:[#allocation8 + $0x1a8] sm:$0xff] }
 0xa79   :  { %4312 = vmatprep.subr.bf16.mxu1 %v4671_v0  ;;  %v4352_v54 = vpack.c.bf16 %v2238_v52, %v2237_v50  ;;  %v2428_v50 = vld [vmem:[#allocation11 + $0x198] sm:$0xff] }
 0xa7c   :  { %4314 = vmatpush3.bf16.msra.mxu1 %v4313_v56  ;;  %v2240_v56 = vld [vmem:[#allocation8 + $0x1b8] sm:$0xff] }
 0xa7d   :  { %4315 = vmatprep.subr.bf16.mxu1 %v4671_v0  ;;  %v4355_v57 = vpack.c.bf16 %v2240_v56, %v2239_v55  ;;  %v2430_v55 = vld [vmem:[#allocation11 + $0x1a8] sm:$0xff] }
 0xa80   :  { %4317 = vmatpush3.bf16.msra.mxu1 %v4316_v60  ;;  %v2242_v60 = vld [vmem:[#allocation8 + $0x1c8] sm:$0xff] }
 0xa81   :  { %4318 = vmatprep.subr.bf16.mxu1 %v4671_v0  ;;  %v4358_v61 = vpack.c.bf16 %v2242_v60, %v2241_v59  ;;  %v2432_v59 = vld [vmem:[#allocation11 + $0x1b8] sm:$0xff] }
 0xa84   :  { %4320 = vmatpush3.bf16.msra.mxu1 %v4319_v16 }
 0xa85   :  { %4345 = vmatprep.subr.bf16.mxu1 %v4671_v0 }
 0xb3a   :  { %v1918_v53 = vpop.f32.mrb[16].mxu1 }
 0xb3b   :  { %v1919_v43 = vadd.f32 %v2580_v6, %v1918_v53  ;;  %v3630_v10 = vpop.f32.mrb[17].mxu1  ;;  %v4364_v6 = vpack.c.bf16 %v2246_v5, %v2245_v3  ;;  %v2247_v53 = vld [vmem:[#allocation8 + $0x1f0] sm:$0xff]  ;;  %v2436_v3 = vld [vmem:[#allocation11 + $0x1d8] sm:$0xff] }
 0xb3c   :  { %v2152_v10 = vld [vmem:[#allocation7 + $0x1f8] sm:$0xff] }
 0xb3d   :  { %v1925_v12 = vadd.f32 %v1924_v8, %v1919_v43  ;;  %v2248_v43 = vld [vmem:[#allocation8 + $0x1f8] sm:$0xff] }
 0xb3e   :  { %v4367_v8 = vpack.c.bf16 %v2248_v43, %v2247_v53  ;;  %v2438_v53 = vld [vmem:[#allocation11 + $0x1e8] sm:$0xff] }
 0xb3f   :  { %v1932_v13 = vmul.f32 %v1930_v9, %v1925_v12  ;;  %v2151_v9 = vld [vmem:[#allocation7 + $0x1f0] sm:$0xff] }
 0xb40   :  { %v4343_v12 = vpack.c.bf16 %v2152_v10, %v2151_v9  ;;  %v2440_v9 = vld [vmem:[#allocation11 + $0x1f8] sm:$0xff] }
 0xb41   :  { %v5194_v4 = vadd.f32 %v1932_v13, %v5104_v7  ;;  %v2140_v7 = vld [vmem:[#allocation7 + $0x198] sm:$0xff]  ;;  %v2585_v13 = vld [vmem:[%s5275_s4 + $0x3] ss:$0 sm:$0xff] }
 0xb42   :  { %v4325_v21 = vpack.c.bf16 %v2140_v7, %v2139_v19  ;;  %v2332_v7 = vld [vmem:[#allocation10 + $0x198] sm:$0xff] }
 0xb43   :  { %v5197_v14 = vmul.f32 %v1941_v62, %v5194_v4  ;;  %v2329_v62 = vld [vmem:[#allocation10 + $0x180] sm:$0xff] }
 0xb44   :  { %v4370_v18 = vpack.c.bf16 %v2330_v58, %v2329_v62  ;;  %v2591_v62 = vld [vmem:[%s5281_s10 + $0x3] ss:$0 sm:$0xff]  ;;  %s4674_s10 = smov [#allocation16]  }
 0xb45   :  { %3664 = vmatmul.mubr.f32.vlgmr.msra.gmra.mrb[18].mxu0 %v5197_v14  ;;  %s2538_s3 = sshll.u32 %s4674_s10, 4  ;;  %s2539_s3 = int_to_ptr.vmem [resolvable:$true] %s2538_s3 }
 0xb46   :  { %3733 = vmatprep.mubr.msk.f32.mxu0 %vm4672_vm0, %v4673_v1  ;;  %4323 = vmatpush3.bf16.msra.mxu0 %v4322_v20  ;;  %v2331_v20 = vld [vmem:[#allocation10 + $0x190] sm:$0xff]  ;;  %p4630_p9 = scmp.lt.s32.totalorder %s2539_s3, %s2539_s3 }
 0xb47   :  { %4324 = vmatprep.subr.bf16.mxu0 %v4671_v0 }
 0xb4a   :  { %4326 = vmatpush3.bf16.msra.mxu0 %v4325_v21  ;;  %v4373_v21 = vpack.c.bf16 %v2332_v7, %v2331_v20  ;;  %v1936_v7 = vsub.f32 1.0, %v5189_v11 }
 0xb4b   :  { %4327 = vmatprep.subr.bf16.mxu0 %v4671_v0 }
 0xb4e   :  { %4329 = vmatpush3.bf16.msra.mxu0 %v4328_v24  ;;  %v4376_v24 = vpack.c.bf16 %v2334_v23, %v2333_v22  ;;  %v2592_v22 = vld [vmem:[#allocation13 + $0x3] ss:$0 sm:$0xff] }
 0xb4f   :  { %4330 = vmatprep.subr.bf16.mxu0 %v4671_v0 }
 0xb52   :  { %4332 = vmatpush3.bf16.msra.mxu0 %v4331_v27  ;;  %v4379_v27 = vpack.c.bf16 %v2336_v26, %v2335_v25  ;;  %v2527_v26 = vrot.slane %v1936_v7, %v4899_v39 }
 0xb53   :  { %4333 = vmatprep.subr.bf16.mxu0 %v4671_v0 }
 0xb56   :  { %4335 = vmatpush3.bf16.msra.mxu0 %v4334_v30  ;;  %v4382_v30 = vpack.c.bf16 %v2338_v29, %v2337_v28 }
 0xb57   :  { %4336 = vmatprep.subr.bf16.mxu0 %v4671_v0 }
 0xb5a   :  { %4338 = vmatpush3.bf16.msra.mxu0 %v4337_v33  ;;  %v2341_v33 = vld [vmem:[#allocation10 + $0x1e0] sm:$0xff] }
 0xb5b   :  { %4339 = vmatprep.subr.bf16.mxu0 %v4671_v0  ;;  %v4388_v35 = vpack.c.bf16 %v2342_v34, %v2341_v33 }
 0xb5e   :  { %4341 = vmatpush3.bf16.msra.mxu0 %v4340_v36  ;;  %v2343_v36 = vld [vmem:[#allocation10 + $0x1f0] sm:$0xff] }
 0xb5f   :  { %4342 = vmatprep.subr.bf16.mxu0 %v4671_v0 }
 0xb62   :  { %4344 = vmatpush3.bf16.msra.mxu0 %v4343_v12 }
 0xb63   :  { %4369 = vmatprep.subr.bf16.mxu0 %v4671_v0 }
 0xc18   :  { %v2035_v41 = vpop.f32.mrb[18].mxu0 }
 0xc19   :  { %v2036_v42 = vadd.f32 %v2583_v37, %v2035_v41  ;;  %v3665_v44 = vpop.f32.mrb[19].mxu0  ;;  %v2344_v37 = vld [vmem:[#allocation10 + $0x1f8] sm:$0xff] }
 0xc1a   :  { %v4391_v40 = vpack.c.bf16 %v2344_v37, %v2343_v36 }
 0xc1b   :  { %v2039_v46 = vmax.f32 %v2036_v42, 0.0 }
 0xc1d   :  { %3699 = vmatmul.mubr.f32.vlgmr.msra.gmra.mrb[18].mxu1 %v2039_v46  ;;  %v2425_v46 = vld [vmem:[#allocation11 + $0x180] sm:$0xff] }
 0xc1e   :  { %4347 = vmatpush3.bf16.msra.mxu1 %v4346_v45  ;;  %3768 = vmatprep.mubr.msk.f32.mxu1 %vm4672_vm0, %v4673_v1  ;;  %v4394_v48 = vpack.c.bf16 %v2426_v47, %v2425_v46 }
 0xc1f   :  { %4348 = vmatprep.subr.bf16.mxu1 %v4671_v0 }
 0xc22   :  { %4350 = vmatpush3.bf16.msra.mxu1 %v4349_v49  ;;  %v2427_v49 = vld [vmem:[#allocation11 + $0x190] sm:$0xff] }
 0xc23   :  { %4351 = vmatprep.subr.bf16.mxu1 %v4671_v0  ;;  %v4397_v52 = vpack.c.bf16 %v2428_v50, %v2427_v49 }
 0xc26   :  { %4353 = vmatpush3.bf16.msra.mxu1 %v4352_v54  ;;  %v2429_v54 = vld [vmem:[#allocation11 + $0x1a0] sm:$0xff] }
 0xc27   :  { %4354 = vmatprep.subr.bf16.mxu1 %v4671_v0  ;;  %v4400_v56 = vpack.c.bf16 %v2430_v55, %v2429_v54 }
 0xc2a   :  { %4356 = vmatpush3.bf16.msra.mxu1 %v4355_v57  ;;  %v2431_v57 = vld [vmem:[#allocation11 + $0x1b0] sm:$0xff] }
 0xc2b   :  { %4357 = vmatprep.subr.bf16.mxu1 %v4671_v0  ;;  %v4403_v60 = vpack.c.bf16 %v2432_v59, %v2431_v57 }
 0xc2e   :  { %4359 = vmatpush3.bf16.msra.mxu1 %v4358_v61  ;;  %v2433_v61 = vld [vmem:[#allocation11 + $0x1c0] sm:$0xff] }
 0xc2f   :  { %4360 = vmatprep.subr.bf16.mxu1 %v4671_v0  ;;  %v4406_v63 = vpack.c.bf16 %v2434_v51, %v2433_v61 }
 0xc32   :  { %4362 = vmatpush3.bf16.msra.mxu1 %v4361_v2  ;;  %v2435_v2 = vld [vmem:[#allocation11 + $0x1d0] sm:$0xff] }
 0xc33   :  { %4363 = vmatprep.subr.bf16.mxu1 %v4671_v0  ;;  %v4409_v5 = vpack.c.bf16 %v2436_v3, %v2435_v2 }
 0xc36   :  { %4365 = vmatpush3.bf16.msra.mxu1 %v4364_v6  ;;  %v2437_v6 = vld [vmem:[#allocation11 + $0x1e0] sm:$0xff] }
 0xc37   :  { %4366 = vmatprep.subr.bf16.mxu1 %v4671_v0  ;;  %v4412_v43 = vpack.c.bf16 %v2438_v53, %v2437_v6 }
 0xc3a   :  { %4368 = vmatpush3.bf16.msra.mxu1 %v4367_v8  ;;  %v2439_v8 = vld [vmem:[#allocation11 + $0x1f0] sm:$0xff] }
 0xc3b   :  { %4393 = vmatprep.subr.bf16.mxu1 %v4671_v0  ;;  %v4415_v10 = vpack.c.bf16 %v2440_v9, %v2439_v8 }
 0xc3d   :  { %3769 = vmatmul.mubr.f32.vlgmr.msra.gmra.mrb[20].mxu1 %v5197_v14 }
 0xc3e   :  { %3838 = vmatprep.mubr.msk.f32.mxu1 %vm4672_vm0, %v4673_v1  ;;  %4395 = vmatpush3.bf16.msra.mxu1 %v4394_v48 }
 0xc3f   :  { %4396 = vmatprep.subr.bf16.mxu1 %v4671_v0 }
 0xc42   :  { %4398 = vmatpush3.bf16.msra.mxu1 %v4397_v52 }
 0xc43   :  { %4399 = vmatprep.subr.bf16.mxu1 %v4671_v0 }
 0xc46   :  { %4401 = vmatpush3.bf16.msra.mxu1 %v4400_v56 }
 0xc47   :  { %4402 = vmatprep.subr.bf16.mxu1 %v4671_v0 }
 0xc4a   :  { %4404 = vmatpush3.bf16.msra.mxu1 %v4403_v60 }
 0xc4b   :  { %4405 = vmatprep.subr.bf16.mxu1 %v4671_v0 }
 0xc4e   :  { %4407 = vmatpush3.bf16.msra.mxu1 %v4406_v63 }
 0xc4f   :  { %4408 = vmatprep.subr.bf16.mxu1 %v4671_v0 }
 0xc52   :  { %4410 = vmatpush3.bf16.msra.mxu1 %v4409_v5 }
 0xc53   :  { %4411 = vmatprep.subr.bf16.mxu1 %v4671_v0 }
 0xc56   :  { %4413 = vmatpush3.bf16.msra.mxu1 %v4412_v43 }
 0xc57   :  { %4414 = vmatprep.subr.bf16.mxu1 %v4671_v0 }
 0xc5a   :  { %4416 = vmatpush3.bf16.msra.mxu1 %v4415_v10 }
 0xcf0   :  { %v2131_v15 = vpop.f32.mrb[18].mxu1 }
 0xcf1   :  { %v2132_v16 = vadd.f32 %v2585_v13, %v2131_v15  ;;  %v3700_v17 = vpop.f32.mrb[19].mxu1 }
 0xcf3   :  { %v2135_v19 = vmax.f32 %v2132_v16, 0.0 }
 0xcf5   :  { %3734 = vmatmul.mubr.f32.vlgmr.msra.gmra.mrb[20].mxu0 %v2135_v19 }
 0xcf6   :  { %4371 = vmatpush3.bf16.msra.mxu0 %v4370_v18  ;;  %3803 = vmatprep.mubr.msk.f32.mxu0 %vm4672_vm0, %v4673_v1  ;;  %v2339_v1 = vld [vmem:[#allocation10 + $0x1d0] sm:$0xff]  ;;  %v2587_v18 = vld [vmem:[%s5277_s6 + $0x3] ss:$0 sm:$0xff]  ;;  %s4625_s6 = scalar_lea.vmem %s2539_s3, 128 }
 0xcf7   :  { %4372 = vmatprep.subr.bf16.mxu0 %v4671_v0  ;;  %v4385_v32 = vpack.c.bf16 %v2340_v31, %v2339_v1  ;;  %p4626_p8 = scmp.ne.s32.totalorder %s2539_s3, %s4625_s6  ;;  %p4631_p10 = scmp.lt.s32.totalorder %s4625_s6, %s4625_s6 }
 0xcf9   :  { %p4632_p11 = por %p4631_p10, %p4630_p9 }
 0xcfa   :  { %4374 = vmatpush3.bf16.msra.mxu0 %v4373_v21 }
 0xcfb   :  { %4375 = vmatprep.subr.bf16.mxu0 %v4671_v0  ;;  %p4633_p12 = pnand %p4632_p11, %p4626_p8 }
 0xcfe   :  { %4377 = vmatpush3.bf16.msra.mxu0 %v4376_v24 }
 0xcff   :  { %4378 = vmatprep.subr.bf16.mxu0 %v4671_v0 }
 0xd02   :  { %4380 = vmatpush3.bf16.msra.mxu0 %v4379_v27 }
 0xd03   :  { %4381 = vmatprep.subr.bf16.mxu0 %v4671_v0 }
 0xd06   :  { %4383 = vmatpush3.bf16.msra.mxu0 %v4382_v30 }
 0xd07   :  { %4384 = vmatprep.subr.bf16.mxu0 %v4671_v0 }
 0xd0a   :  { %4386 = vmatpush3.bf16.msra.mxu0 %v4385_v32 }
 0xd0b   :  { %4387 = vmatprep.subr.bf16.mxu0 %v4671_v0 }
 0xd0e   :  { %4389 = vmatpush3.bf16.msra.mxu0 %v4388_v35 }
 0xd0f   :  { %4390 = vmatprep.subr.bf16.mxu0 %v4671_v0 }
 0xd10   :  { %v2323_v41 = vpop.f32.mrb[20].mxu1 }
 0xd11   :  { %v2324_v42 = vadd.f32 %v2589_v38, %v2323_v41  ;;  %v3770_v44 = vpop.f32.mrb[21].mxu1 }
 0xd12   :  { %4392 = vmatpush3.bf16.msra.mxu0 %v4391_v40 }
 0xd13   :  { %v2327_v45 = vmax.f32 %v2324_v42, 0.0 }
 0xd15   :  { %3804 = vmatmul.mubr.f32.vlgmr.msra.gmra.mrb[22].mxu0 %v2327_v45 }
 0xdc8   :  { %v2227_v12 = vpop.f32.mrb[20].mxu0 }
 0xdc9   :  { %v3735_v13 = vpop.f32.mrb[21].mxu0  ;;  %v2228_v0 = vadd.f32 %v2587_v18, %v2227_v12 }
 0xdcb   :  { %4445 = vtanh.f32 %v2228_v0 }
 0xdd5   :  { %v4446_v19 = vpop.eup %4445 }
 0xdd6   :  { %v2519_v20 = vmul.f32 1.442695, %v4446_v19 }
 0xdd8   :  { %4447 = vpow2.f32 %v2519_v20 }
 0xde2   :  { %v4448_v21 = vpop.eup %4447 }
 0xde3   :  { %v2521_v25 = vmul.f32 %v4448_v21, %v5194_v4 }
 0xde8   :  { %v2419_v58 = vpop.f32.mrb[22].mxu0 }
 0xde9   :  { %v2420_v15 = vadd.f32 %v2591_v62, %v2419_v58  ;;  %v3805_v16 = vpop.f32.mrb[23].mxu0 }
 0xdeb   :  { %v2423_v17 = vmax.f32 %v2420_v15, 0.0 }
 0xded   :  { %3839 = vmatmul.mubr.f32.vlgmr.msra.gmra.mrb[22].mxu1 %v2423_v17 }
 0xec0   :  { %v2515_v23 = vpop.f32.mrb[22].mxu1 }
 0xec1   :  { %v2516_v24 = vadd.f32 %v2592_v22, %v2515_v23  ;;  %v3840_v27 = vpop.f32.mrb[23].mxu1 }
 0xec3   :  { %v2522_v28 = vadd.f32 %v2521_v25, %v2516_v24 }
 0xec5   :  { %v2529_v29 = vmul.f32 %v2527_v26, %v2522_v28 }
 0xec7   :  { %v2530_v30 = vadd.f32 %v2529_v29, %v5197_v14 }
 0xec9   :  { %2531 = vst [vmem:[#allocation16] sm:$0xff] %v2530_v30 }
 0xeca   :  { %4636 = shalt.err (!%p4633_p12)
}
 0xecb   :  { %s4637_s30 = scalar_lea.hbm %s5285_s14, 128 }
 0xecc   :  { %p4638_p13 = scmp.ne.s32.totalorder %s5285_s14, %s4637_s30  ;;  %p4641_p0 = scmp.lt.u32.totalorder %s4637_s30, %s5285_s14 }
 0xece   :  { %p4643_p1 = pnand %p4641_p0, %p4638_p13 }
 0xed0   :  { %4646 = shalt.err (!%p4643_p1)
}
 0xed1   :  { %2541 = dma.vmem_to_hbm [thread:$0]  %s2539_s3, 128, %s5285_s14, [#allocation4]  }
 0xed2   :  { %4657 = dma.done.wait [#allocation4], 128  }
 0xed3   :  { %4658 = vsyncadd [#allocation4], 4294967168 }
 0xed4   :  { %2545 = vsyncpa [#allocation3], 1 }
 0xed5   :  { %2546 = vsyncpa [#allocation6], 1 }
 0xed6   :  { %2547 = vsyncpa [#allocation9], 1 }
 0xed7   :  { %2548 = vsyncpa [#allocation12], 1 }
 0xed8   :  { %2549 = vsyncpa [#allocation15], 1 }
 0xed9   :  { %2550 = vsyncpa [#allocation4], 1 }

</bundles_post_ra>
